<compile_context>
chip_gen: v6e
topology: v6e:2x2x1
jax: 0.10.0
libtpu: 0.0.40
codegen_flags: <defaults>
</compile_context>

<pallas_src>
import jax
import jax.numpy as jnp
from jax.experimental import pallas as pl
from jax.experimental.pallas import tpu as pltpu


# ------------------------------ Pallas kernel -------------------------------

def _lora_qkv_kernel(x_ref, wqkv_ref, bqkv_ref, wa_ref, wbq_ref, wbv_ref, o_ref):
    x = x_ref[...]                                            # (bm, C)   bf16
    # Base qkv projection: (bm, 3C), f32 accumulation on the MXU.
    acc = jnp.dot(x, wqkv_ref[...], preferred_element_type=jnp.float32)
    acc = acc + bqkv_ref[...]                                 # fused bias add
    # Shared LoRA "A" matmul: x @ [A_q | A_v] -> (bm, 2r), stays in vregs.
    h = jnp.dot(x, wa_ref[...], preferred_element_type=jnp.float32)
    h = h.astype(wbq_ref.dtype)
    # Per-branch "B" matmuls: zero-padded rows pick out the right rank block,
    # so no lane-slicing of the tiny (bm, 2r) activation is needed.
    lq = jnp.dot(h, wbq_ref[...], preferred_element_type=jnp.float32)  # (bm, C)
    lv = jnp.dot(h, wbv_ref[...], preferred_element_type=jnp.float32)  # (bm, C)

    C = lq.shape[1]
    # Lane-aligned (C % 128 == 0 for SAM dims) slice stores; the LoRA adds
    # are free VPU filler under the MXU work of the next grid step.
    o_ref[:, :C] = (acc[:, :C] + lq).astype(o_ref.dtype)
    o_ref[:, C:2 * C] = acc[:, C:2 * C].astype(o_ref.dtype)
    o_ref[:, 2 * C:] = (acc[:, 2 * C:] + lv).astype(o_ref.dtype)


# ------------------------------ wrapper --------------------------------------

def lora_qkv(x, w_qkv, b_qkv, a_q, b_q, a_v, b_v,
             *, block_m=512, compute_dtype=jnp.bfloat16):
    """Fused LoRA-QKV forward.

    x:       (B, H, W, C)
    w_qkv:   (C, 3C)    (stored (in, out); PyTorch weight is the transpose)
    b_qkv:   (3C,)
    a_q/a_v: (C, r)     b_q/b_v: (r, C)   (bias-free LoRA adapters)
    returns  (B, H, W, 3C) float32
    """
    B, H, W, C = x.shape
    r = a_q.shape[1]
    N = 3 * C
    M = B * H * W

    # Row tile: whole thing if it fits, else a fixed tile with row padding so
    # large, non-divisible M never forces a single giant (VMEM-busting) tile.
    if M <= block_m:
        bm, m_pad = M, M
    else:
        bm = block_m                       # multiple of 8 (sublane aligned)
        m_pad = ((M + bm - 1) // bm) * bm

    # Pack LoRA weights (tiny; done once per call outside the grid loop).
    a_comb = jnp.concatenate([a_q, a_v], axis=1).astype(compute_dtype)    # (C, 2r)
    bq_pad = jnp.zeros((2 * r, C), compute_dtype).at[:r, :].set(
        b_q.astype(compute_dtype))                                        # (2r, C)
    bv_pad = jnp.zeros((2 * r, C), compute_dtype).at[r:, :].set(
        b_v.astype(compute_dtype))                                        # (2r, C)

    x2 = x.reshape(M, C).astype(compute_dtype)
    if m_pad != M:
        x2 = jnp.pad(x2, ((0, m_pad - M), (0, 0)))
    wq = w_qkv.astype(compute_dtype)
    bq = b_qkv.reshape(1, N).astype(jnp.float32)

    flops = 2 * m_pad * C * N + 2 * m_pad * C * (2 * r) + 2 * (2 * m_pad * (2 * r) * C)
    bytes_accessed = (m_pad * C * 2 + C * N * 2 + N * 4
                      + C * (2 * r) * 2 + 2 * (2 * r) * C * 2 + m_pad * N * 4)

    out = pl.pallas_call(
        _lora_qkv_kernel,
        out_shape=jax.ShapeDtypeStruct((m_pad, N), jnp.float32),
        grid=(m_pad // bm,),
        in_specs=[
            pl.BlockSpec((bm, C), lambda i: (i, 0)),        # x row tile
            pl.BlockSpec((C, N), lambda i: (0, 0)),         # qkv weight (resident)
            pl.BlockSpec((1, N), lambda i: (0, 0)),         # qkv bias
            pl.BlockSpec((C, 2 * r), lambda i: (0, 0)),     # packed LoRA A
            pl.BlockSpec((2 * r, C), lambda i: (0, 0)),     # padded LoRA B (Q)
            pl.BlockSpec((2 * r, C), lambda i: (0, 0)),     # padded LoRA B (V)
        ],
        out_specs=pl.BlockSpec((bm, N), lambda i: (i, 0)),
        compiler_params=pltpu.CompilerParams(
            dimension_semantics=("parallel",)),
        cost_estimate=pl.CostEstimate(flops=int(flops), transcendentals=0,
                                      bytes_accessed=int(bytes_accessed)),
    )(x2, wq, bq, a_comb, bq_pad, bv_pad)

    if m_pad != M:
        out = out[:M]
    return out.reshape(B, H, W, N)


# ------------------------------ pure-JAX reference ---------------------------

def lora_qkv_ref(x, w_qkv, b_qkv, a_q, b_q, a_v, b_v):
    B, H, W, C = x.shape
    qkv = jnp.einsum('bhwc,cn->bhwn', x, w_qkv) + b_qkv
    new_q = (x @ a_q) @ b_q
    new_v = (x @ a_v) @ b_v
    qkv = qkv.at[..., :C].add(new_q)
    qkv = qkv.at[..., 2 * C:].add(new_v)
    return qkv


# ------------------------------ main ------------------------------------------

if __name__ == "__main__":
    # Small but lane-dense shapes: dim=128 -> output width 3*dim=384 (3x128).
    B, H, W, C, R = 2, 16, 16, 128, 8

    key = jax.random.PRNGKey(0)
    ks = jax.random.split(key, 7)
    x = jax.random.normal(ks[0], (B, H, W, C), jnp.float32)
    w_qkv = 0.02 * jax.random.normal(ks[1], (C, 3 * C), jnp.float32)
    b_qkv = 0.01 * jax.random.normal(ks[2], (3 * C,), jnp.float32)
    a_q = 0.02 * jax.random.normal(ks[3], (C, R), jnp.float32)
    b_q = 0.02 * jax.random.normal(ks[4], (R, C), jnp.float32)
    a_v = 0.02 * jax.random.normal(ks[5], (C, R), jnp.float32)
    # LoRA "B" is conventionally zero-init; use nonzero values so the LoRA
    # path is numerically exercised.
    b_v = 0.02 * jax.random.normal(ks[6], (R, C), jnp.float32)

    fwd = jax.jit(lora_qkv)
    out = jax.block_until_ready(fwd(x, w_qkv, b_qkv, a_q, b_q, a_v, b_v))

    ref = lora_qkv_ref(x, w_qkv, b_qkv, a_q, b_q, a_v, b_v)

    assert out.shape == (B, H, W, 3 * C), out.shape
    assert out.dtype == jnp.float32
    assert bool(jnp.all(jnp.isfinite(out)))
    max_err = float(jnp.max(jnp.abs(out - ref)))
    assert max_err < 5e-2, f"max abs err {max_err}"   # bf16-MXU vs f32 reference
    print("KERNEL_OK")
</pallas_src>

<mosaic_0001>
module attributes {stable_mosaic.version = 11 : i64} {
  func.func @_lora_qkv_kernel(%arg0: i32, %arg1: memref<512x128xbf16, #tpu.memory_space<vmem>>, %arg2: memref<128x384xbf16, #tpu.memory_space<vmem>>, %arg3: memref<1x384xf32, #tpu.memory_space<vmem>>, %arg4: memref<128x16xbf16, #tpu.memory_space<vmem>>, %arg5: memref<16x128xbf16, #tpu.memory_space<vmem>>, %arg6: memref<16x128xbf16, #tpu.memory_space<vmem>>, %arg7: memref<512x384xf32, #tpu.memory_space<vmem>>) attributes {dimension_semantics = [#tpu.dimension_semantics<parallel>], iteration_bounds = array<i64: 1>, scalar_prefetch = 0 : i64, scratch_operands = 0 : i64, tpu.core_type = #tpu.core_type<tc>, window_params = [{transform_indices = @transform_0, window_bounds = array<i64: 512, 128>}, {pipeline_mode = #tpu.pipeline_mode<synchronous>, transform_indices = @transform_1, window_bounds = array<i64: 128, 384>}, {pipeline_mode = #tpu.pipeline_mode<synchronous>, transform_indices = @transform_2, window_bounds = array<i64: 1, 384>}, {pipeline_mode = #tpu.pipeline_mode<synchronous>, transform_indices = @transform_3, window_bounds = array<i64: 128, 16>}, {pipeline_mode = #tpu.pipeline_mode<synchronous>, transform_indices = @transform_4, window_bounds = array<i64: 16, 128>}, {pipeline_mode = #tpu.pipeline_mode<synchronous>, transform_indices = @transform_5, window_bounds = array<i64: 16, 128>}, {transform_indices = @transform_6, window_bounds = array<i64: 512, 384>}]} {
    %c0 = arith.constant 0 : index
    %c0_0 = arith.constant 0 : index
    %0 = vector.load %arg1[%c0, %c0_0] : memref<512x128xbf16, #tpu.memory_space<vmem>>, vector<512x128xbf16>
    %c0_1 = arith.constant 0 : index
    %c0_2 = arith.constant 0 : index
    %1 = vector.load %arg2[%c0_1, %c0_2] : memref<128x384xbf16, #tpu.memory_space<vmem>>, vector<128x384xbf16>
    %cst = arith.constant dense<0.000000e+00> : vector<512x384xf32>
    %2 = tpu.matmul %0, %1, %cst {dimension_numbers = #tpu.dot_dimension_numbers<[1], [0], [0], [1], [0, 0, 1, 1], [], []>} : vector<512x128xbf16>, vector<128x384xbf16>, vector<512x384xf32> -> vector<512x384xf32>
    %c0_3 = arith.constant 0 : index
    %c0_4 = arith.constant 0 : index
    %3 = vector.load %arg3[%c0_3, %c0_4] : memref<1x384xf32, #tpu.memory_space<vmem>>, vector<1x384xf32>
    %4 = vector.broadcast %3 : vector<1x384xf32> to vector<512x384xf32>
    %5 = arith.addf %2, %4 : vector<512x384xf32>
    %c0_5 = arith.constant 0 : index
    %c0_6 = arith.constant 0 : index
    %6 = vector.load %arg4[%c0_5, %c0_6] : memref<128x16xbf16, #tpu.memory_space<vmem>>, vector<128x16xbf16>
    %cst_7 = arith.constant dense<0.000000e+00> : vector<512x16xf32>
    %7 = tpu.matmul %0, %6, %cst_7 {dimension_numbers = #tpu.dot_dimension_numbers<[1], [0], [0], [1], [0, 0, 1, 1], [], []>} : vector<512x128xbf16>, vector<128x16xbf16>, vector<512x16xf32> -> vector<512x16xf32>
    %8 = arith.truncf %7 : vector<512x16xf32> to vector<512x16xbf16>
    %c0_8 = arith.constant 0 : index
    %c0_9 = arith.constant 0 : index
    %9 = vector.load %arg5[%c0_8, %c0_9] : memref<16x128xbf16, #tpu.memory_space<vmem>>, vector<16x128xbf16>
    %cst_10 = arith.constant dense<0.000000e+00> : vector<512x128xf32>
    %10 = tpu.matmul %8, %9, %cst_10 {dimension_numbers = #tpu.dot_dimension_numbers<[1], [0], [0], [1], [0, 0, 1, 1], [], []>} : vector<512x16xbf16>, vector<16x128xbf16>, vector<512x128xf32> -> vector<512x128xf32>
    %c0_11 = arith.constant 0 : index
    %c0_12 = arith.constant 0 : index
    %11 = vector.load %arg6[%c0_11, %c0_12] : memref<16x128xbf16, #tpu.memory_space<vmem>>, vector<16x128xbf16>
    %cst_13 = arith.constant dense<0.000000e+00> : vector<512x128xf32>
    %12 = tpu.matmul %8, %11, %cst_13 {dimension_numbers = #tpu.dot_dimension_numbers<[1], [0], [0], [1], [0, 0, 1, 1], [], []>} : vector<512x16xbf16>, vector<16x128xbf16>, vector<512x128xf32> -> vector<512x128xf32>
    %13 = vector.extract_strided_slice %5 {offsets = [0, 0], sizes = [512, 128], strides = [1, 1]} : vector<512x384xf32> to vector<512x128xf32>
    %14 = arith.addf %13, %10 : vector<512x128xf32>
    %c0_14 = arith.constant 0 : index
    %c0_15 = arith.constant 0 : index
    %15 = vector.load %arg7[%c0_14, %c0_15] : memref<512x384xf32, #tpu.memory_space<vmem>>, vector<512x128xf32>
    tpu.vector_store %arg7[%c0_14, %c0_15], %14 {strides = array<i32>} : memref<512x384xf32, #tpu.memory_space<vmem>>, vector<512x128xf32>,
    %16 = vector.extract_strided_slice %5 {offsets = [0, 128], sizes = [512, 128], strides = [1, 1]} : vector<512x384xf32> to vector<512x128xf32>
    %c0_16 = arith.constant 0 : index
    %c128 = arith.constant 128 : index
    %17 = vector.load %arg7[%c0_16, %c128] : memref<512x384xf32, #tpu.memory_space<vmem>>, vector<512x128xf32>
    tpu.vector_store %arg7[%c0_16, %c128], %16 {strides = array<i32>} : memref<512x384xf32, #tpu.memory_space<vmem>>, vector<512x128xf32>,
    %18 = vector.extract_strided_slice %5 {offsets = [0, 256], sizes = [512, 128], strides = [1, 1]} : vector<512x384xf32> to vector<512x128xf32>
    %19 = arith.addf %18, %12 : vector<512x128xf32>
    %c0_17 = arith.constant 0 : index
    %c256 = arith.constant 256 : index
    %20 = vector.load %arg7[%c0_17, %c256] : memref<512x384xf32, #tpu.memory_space<vmem>>, vector<512x128xf32>
    tpu.vector_store %arg7[%c0_17, %c256], %19 {strides = array<i32>} : memref<512x384xf32, #tpu.memory_space<vmem>>, vector<512x128xf32>,
    return
  }
  func.func @transform_0(%arg0: i32) -> (i32, i32) {
    %c0_i32 = arith.constant 0 : i32
    %c0_i32_0 = arith.constant 0 : i32
    return %arg0, %c0_i32 : i32, i32
  }
  func.func @transform_1(%arg0: i32) -> (i32, i32) {
    %c0_i32 = arith.constant 0 : i32
    %c0_i32_0 = arith.constant 0 : i32
    %c0_i32_1 = arith.constant 0 : i32
    return %c0_i32, %c0_i32_0 : i32, i32
  }
  func.func @transform_2(%arg0: i32) -> (i32, i32) {
    %c0_i32 = arith.constant 0 : i32
    %c0_i32_0 = arith.constant 0 : i32
    %c0_i32_1 = arith.constant 0 : i32
    return %c0_i32, %c0_i32_0 : i32, i32
  }
  func.func @transform_3(%arg0: i32) -> (i32, i32) {
    %c0_i32 = arith.constant 0 : i32
    %c0_i32_0 = arith.constant 0 : i32
    %c0_i32_1 = arith.constant 0 : i32
    return %c0_i32, %c0_i32_0 : i32, i32
  }
  func.func @transform_4(%arg0: i32) -> (i32, i32) {
    %c0_i32 = arith.constant 0 : i32
    %c0_i32_0 = arith.constant 0 : i32
    %c0_i32_1 = arith.constant 0 : i32
    return %c0_i32, %c0_i32_0 : i32, i32
  }
  func.func @transform_5(%arg0: i32) -> (i32, i32) {
    %c0_i32 = arith.constant 0 : i32
    %c0_i32_0 = arith.constant 0 : i32
    %c0_i32_1 = arith.constant 0 : i32
    return %c0_i32, %c0_i32_0 : i32, i32
  }
  func.func @transform_6(%arg0: i32) -> (i32, i32) {
    %c0_i32 = arith.constant 0 : i32
    %c0_i32_0 = arith.constant 0 : i32
    return %arg0, %c0_i32 : i32, i32
  }
}

</mosaic_0001>

<bundles_post_ra>
// kernel: lora_qkv.1
= control target key start
LH: loop header
LB: loop body
LE: loop exit
PB: predicated region body
PF: predicated region fallthrough
CT: control target
= control target key end

     0   :  { %v3180_v5 = vmov 0   ;;  %s4271_s0 = inlined_call_operand.vmem [shape: bf16[512,128], index: 0, kind: input, shape index: {}]   ;;  %s4272_s1 = inlined_call_operand.vmem [shape: bf16[128,384], index: 1, kind: input, shape index: {}]   ;;  %s4273_s2 = inlined_call_operand.vmem [shape: f32[1,384], index: 2, kind: input, shape index: {}]   ;;  %s4274_s3 = inlined_call_operand.vmem [shape: bf16[128,16], index: 3, kind: input, shape index: {}]   ;;  %s4275_s4 = inlined_call_operand.vmem [shape: bf16[16,128], index: 4, kind: input, shape index: {}]   ;;  %s4276_s5 = inlined_call_operand.vmem [shape: bf16[16,128], index: 5, kind: input, shape index: {}]   ;;  %s4277_s6 = inlined_call_operand.hbm [shape: f32[512,384], index: 6, kind: output, shape index: {}]  }
   0x1   :  { %v3084_v0 = vld [vmem:[%s4272_s1 + $0xb0] ss:$12 sps:$4 sm:$0xff]   ;;  %v3085_v1 = vld [vmem:[%s4272_s1 + $0x98] ss:$12 sps:$4 sm:$0xff]   ;;  %v3086_v2 = vld [vmem:[%s4272_s1 + $0x80] ss:$12 sps:$4 sm:$0xff]   ;;  %490 = vmatprep.mubr.bf16.mxu0 %v3180_v5 }
   0x2   :  { %2788 = vmatprep.subr.bf16.mxu1 %v3084_v0  ;;  %v3087_v3 = vld [vmem:[%s4272_s1 + $0x68] ss:$12 sps:$4 sm:$0xff]   ;;  %v3234_v4 = vld [vmem:[%s4271_s0] sm:$0xff]   ;;  %v3088_v6 = vld [vmem:[%s4272_s1 + $0x50] ss:$12 sps:$4 sm:$0xff]  }
   0x3   :  { %2789 = vmatpush3.bf16.msra.mxu1 %v3084_v0  ;;  %2804 = vmatprep.mubr.bf16.mxu1 %v3234_v4  ;;  %v3089_v7 = vld [vmem:[%s4272_s1 + $0x38] ss:$12 sps:$4 sm:$0xff]   ;;  %v3090_v8 = vld [vmem:[%s4272_s1 + $0x20] ss:$12 sps:$4 sm:$0xff]   ;;  %v3107_v10 = vld [vmem:[%s4272_s1 + $0xa8] ss:$12 sps:$4 sm:$0xff]  }
   0x4   :  { %2790 = vmatprep.subr.bf16.mxu1 %v3085_v1  ;;  %v3105_v9 = vld [vmem:[%s4272_s1 + $0xac] ss:$12 sps:$4 sm:$0xff]   ;;  %v3091_v11 = vld [vmem:[%s4272_s1 + $0x8] ss:$12 sps:$4 sm:$0xff]   ;;  %v3112_v13 = vld [vmem:[%s4272_s1 + $0x90] ss:$12 sps:$4 sm:$0xff]  }
   0x5   :  { %458 = vmatprep.subr.bf16.mxu0 %v3105_v9  ;;  %v3110_v12 = vld [vmem:[%s4272_s1 + $0x94] ss:$12 sps:$4 sm:$0xff]   ;;  %v3113_v14 = vld [vmem:[%s4272_s1 + $0x7c] ss:$12 sps:$4 sm:$0xff]   ;;  %v3115_v16 = vld [vmem:[%s4272_s1 + $0x78] ss:$12 sps:$4 sm:$0xff]  }
   0x6   :  { %459 = vmatpush1.bf16.msra.mxu0 %v3107_v10  ;;  %v3094_v15 = vld [vmem:[%s4274_s3 + $0x38] sm:$0xff]   ;;  %v3274_v17 = vld [vmem:[%s4271_s0 + $0x8] sm:$0xff]   ;;  %v3119_v18 = vld [vmem:[%s4272_s1 + $0x64] ss:$12 sps:$4 sm:$0xff]  }
   0x7   :  { %2791 = vmatpush3.bf16.msra.mxu1 %v3085_v1  ;;  %460 = vmatprep.subr.bf16.mxu0 %v3110_v12  ;;  %v3282_v19 = vld [vmem:[%s4271_s0 + $0x10] sm:$0xff]   ;;  %v3121_v21 = vld [vmem:[%s4272_s1 + $0x60] ss:$12 sps:$4 sm:$0xff]   ;;  %v3301_v24 = vld [vmem:[%s4271_s0 + $0x18] sm:$0xff]  }
   0x8   :  { %2792 = vmatprep.subr.bf16.mxu1 %v3086_v2  ;;  %v3099_v20 = vld [vmem:[%s4274_s3 + $0x30] sm:$0xff]   ;;  %v3122_v22 = vld [vmem:[%s4272_s1 + $0x4c] ss:$12 sps:$4 sm:$0xff]   ;;  %v3312_v27 = vld [vmem:[%s4271_s0 + $0x20] sm:$0xff]  }
   0x9   :  { %v3104_v23 = vld [vmem:[%s4274_s3 + $0x28] sm:$0xff]   ;;  %v3127_v26 = vld [vmem:[%s4272_s1 + $0x34] ss:$12 sps:$4 sm:$0xff]   ;;  %v3129_v29 = vld [vmem:[%s4272_s1 + $0x30] ss:$12 sps:$4 sm:$0xff]  }
   0xa   :  { %461 = vmatpush1.bf16.msra.mxu0 %v3112_v13  ;;  %v3124_v25 = vld [vmem:[%s4272_s1 + $0x48] ss:$12 sps:$4 sm:$0xff]   ;;  %v3118_v28 = vld [vmem:[%s4274_s3 + $0x20] sm:$0xff]   ;;  %v3135_v33 = vld [vmem:[%s4274_s3 + $0x18] sm:$0xff]  }
   0xb   :  { %2793 = vmatpush3.bf16.msra.mxu1 %v3086_v2  ;;  %462 = vmatprep.subr.bf16.mxu0 %v3113_v14  ;;  %v3130_v30 = vld [vmem:[%s4272_s1 + $0x1c] ss:$12 sps:$4 sm:$0xff]   ;;  %v3132_v31 = vld [vmem:[%s4272_s1 + $0x18] ss:$12 sps:$4 sm:$0xff]   ;;  %v3342_v35 = vld [vmem:[%s4271_s0 + $0x30] sm:$0xff]  }
   0xc   :  { %2794 = vmatprep.subr.bf16.mxu1 %v3087_v3  ;;  %v3331_v32 = vld [vmem:[%s4271_s0 + $0x28] sm:$0xff]   ;;  %v3136_v34 = vld [vmem:[%s4272_s1 + $0x4] ss:$12 sps:$4 sm:$0xff]   ;;  %v3361_v40 = vld [vmem:[%s4271_s0 + $0x38] sm:$0xff]  }
   0xd   :  { %v3138_v36 = vld [vmem:[%s4272_s1] ss:$12 sps:$4 sm:$0xff]   ;;  %v3144_v37 = vld [vmem:[%s4274_s3 + $0x10] sm:$0xff]  }
   0xe   :  { %463 = vmatpush1.bf16.msra.mxu0 %v3115_v16  ;;  %v3141_v38 = vld [vmem:[%s4275_s4] sm:$0xff]   ;;  %v3149_v39 = vld [vmem:[%s4274_s3 + $0x8] sm:$0xff]  }
   0xf   :  { %2795 = vmatpush3.bf16.msra.mxu1 %v3087_v3  ;;  %464 = vmatprep.subr.bf16.mxu0 %v3119_v18  ;;  %v3366_v41 = vld [vmem:[%s4271_s0 + $0x40] sm:$0xff]  }
  0x10   :  { %2796 = vmatprep.subr.bf16.mxu1 %v3088_v6  ;;  %v3154_v42 = vld [vmem:[%s4274_s3] sm:$0xff]  }
  0x12   :  { %465 = vmatpush1.bf16.msra.mxu0 %v3121_v21 }
  0x13   :  { %2797 = vmatpush3.bf16.msra.mxu1 %v3088_v6  ;;  %466 = vmatprep.subr.bf16.mxu0 %v3122_v22 }
  0x14   :  { %2798 = vmatprep.subr.bf16.mxu1 %v3089_v7 }
  0x16   :  { %467 = vmatpush1.bf16.msra.mxu0 %v3124_v25 }
  0x17   :  { %2799 = vmatpush3.bf16.msra.mxu1 %v3089_v7  ;;  %468 = vmatprep.subr.bf16.mxu0 %v3127_v26 }
  0x18   :  { %2800 = vmatprep.subr.bf16.mxu1 %v3090_v8 }
  0x1a   :  { %469 = vmatpush1.bf16.msra.mxu0 %v3129_v29 }
  0x1b   :  { %2801 = vmatpush3.bf16.msra.mxu1 %v3090_v8  ;;  %470 = vmatprep.subr.bf16.mxu0 %v3130_v30 }
  0x1c   :  { %2802 = vmatprep.subr.bf16.mxu1 %v3091_v11 }
  0x1e   :  { %471 = vmatpush1.bf16.msra.mxu0 %v3132_v31 }
  0x1f   :  { %2803 = vmatpush3.bf16.msra.mxu1 %v3091_v11  ;;  %472 = vmatprep.subr.bf16.mxu0 %v3136_v34 }
  0x20   :  { %2868 = vmatprep.subr.bf16.mxu1 %v3094_v15 }
  0x22   :  { %2805 = vmatmul.mubr.bf16.vlgmr.msra.gmra.mxu1 %v3274_v17  ;;  %473 = vmatpush1.bf16.msra.mxu0 %v3138_v36 }
  0x23   :  { %2869 = vmatpush3.bf16.msra.mxu1 %v3094_v15  ;;  %2808 = vmatprep.mubr.bf16.mxu1 %v3282_v19 }
  0x24   :  { %2870 = vmatprep.subr.bf16.mxu1 %v3099_v20  ;;  %2948 = vmatprep.subr.bf16.mxu0 %v3141_v38 }
  0x25   :  { %491 = vmatmul.mubr.bf16.vlgmr.msra.gmra.mxu0 %v3234_v4 }
  0x26   :  { %2949 = vmatpush3.bf16.msra.mxu0 %v3141_v38  ;;  %500 = vmatprep.mubr.bf16.mxu0 %v3180_v5 }
  0x27   :  { %2871 = vmatpush3.bf16.msra.mxu1 %v3099_v20 }
  0x28   :  { %2872 = vmatprep.subr.bf16.mxu1 %v3104_v23 }
  0x2a   :  { %2809 = vmatmul.mubr.bf16.gmra.mxu1 %v3301_v24 }
  0x2b   :  { %2812 = vmatprep.mubr.bf16.mxu1 %v3312_v27  ;;  %2873 = vmatpush3.bf16.msra.mxu1 %v3104_v23 }
  0x2c   :  { %2874 = vmatprep.subr.bf16.mxu1 %v3118_v28 }
  0x2f   :  { %2875 = vmatpush3.bf16.msra.mxu1 %v3118_v28 }
  0x30   :  { %2876 = vmatprep.subr.bf16.mxu1 %v3135_v33 }
  0x32   :  { %2813 = vmatmul.mubr.bf16.gmra.mxu1 %v3331_v32 }
  0x33   :  { %2816 = vmatprep.mubr.bf16.mxu1 %v3342_v35  ;;  %2877 = vmatpush3.bf16.msra.mxu1 %v3135_v33 }
  0x34   :  { %2878 = vmatprep.subr.bf16.mxu1 %v3144_v37 }
  0x37   :  { %2879 = vmatpush3.bf16.msra.mxu1 %v3144_v37 }
  0x38   :  { %2880 = vmatprep.subr.bf16.mxu1 %v3149_v39 }
  0x3a   :  { %2817 = vmatmul.mubr.bf16.gmra.mxu1 %v3361_v40 }
  0x3b   :  { %2820 = vmatprep.mubr.bf16.mxu1 %v3366_v41  ;;  %2881 = vmatpush3.bf16.msra.mxu1 %v3149_v39 }
  0x3c   :  { %2882 = vmatprep.subr.bf16.mxu1 %v3154_v42 }
  0x3d   :  { %11 = vsyncpa [#allocation3], 0  ;;  %v3378_v43 = vld [vmem:[%s4271_s0 + $0x48] sm:$0xff]   ;;  %v3383_v44 = vld [vmem:[%s4271_s0 + $0x50] sm:$0xff]   ;;  %501 = vmatmul.mubr.bf16.gmra.mxu0 %v3274_v17  ;;  %v123_v9 = vlaneseq  ;;  %vm1493_vm0 = vcmask 130048  }
  0x3e   :  { %510 = vmatprep.mubr.bf16.mxu0 %v3180_v5  ;;  %v3392_v45 = vld [vmem:[%s4271_s0 + $0x58] sm:$0xff]   ;;  %v3397_v46 = vld [vmem:[%s4271_s0 + $0x60] sm:$0xff]   ;;  %v3406_v47 = vld [vmem:[%s4271_s0 + $0x68] sm:$0xff]  }
  0x3f   :  { %2883 = vmatpush3.bf16.msra.mxu1 %v3154_v42  ;;  %v3411_v48 = vld [vmem:[%s4271_s0 + $0x70] sm:$0xff]   ;;  %v3420_v49 = vld [vmem:[%s4271_s0 + $0x78] sm:$0xff]   ;;  %v3425_v50 = vld [vmem:[%s4271_s0 + $0x80] sm:$0xff]   ;;  %v3596_v12 = vshrl.u32 %v123_v9, 7 }
  0x40   :  { %v3434_v51 = vld [vmem:[%s4271_s0 + $0x88] sm:$0xff]   ;;  %v3439_v52 = vld [vmem:[%s4271_s0 + $0x90] sm:$0xff]   ;;  %v3448_v53 = vld [vmem:[%s4271_s0 + $0x98] sm:$0xff]  }
  0x41   :  { %v3453_v54 = vld [vmem:[%s4271_s0 + $0xa0] sm:$0xff]   ;;  %v3465_v56 = vld [vmem:[%s4271_s0 + $0xa8] sm:$0xff]   ;;  %v3470_v57 = vld [vmem:[%s4271_s0 + $0xb0] sm:$0xff]   ;;  %v129_v15 = vsub.s32 1, %v3596_v12 }
  0x42   :  { %2821 = vmatmul.mubr.bf16.gmra.mxu1 %v3378_v43  ;;  %v3157_v55 = vld [vmem:[%s4276_s5] sm:$0xff]   ;;  %v3479_v58 = vld [vmem:[%s4271_s0 + $0xb8] sm:$0xff]   ;;  %v3493_v60 = vld [vmem:[%s4271_s0 + $0xc8] sm:$0xff]  }
  0x43   :  { %2824 = vmatprep.mubr.bf16.mxu1 %v3383_v44  ;;  %3014 = vmatprep.subr.bf16.mxu1 %v3157_v55  ;;  %v3484_v59 = vld [vmem:[%s4271_s0 + $0xc0] sm:$0xff]   ;;  %v3498_v61 = vld [vmem:[%s4271_s0 + $0xd0] sm:$0xff]   ;;  %v3507_v62 = vld [vmem:[%s4271_s0 + $0xd8] sm:$0xff]  }
  0x44   :  { %v3512_v63 = vld [vmem:[%s4271_s0 + $0xe0] sm:$0xff]   ;;  %v3521_v0 = vld [vmem:[%s4271_s0 + $0xe8] sm:$0xff]   ;;  %v3526_v1 = vld [vmem:[%s4271_s0 + $0xf0] sm:$0xff]  }
  0x45   :  { %511 = vmatmul.mubr.bf16.gmra.mxu0 %v3282_v19  ;;  %v3535_v2 = vld [vmem:[%s4271_s0 + $0xf8] sm:$0xff]  }
  0x46   :  { %520 = vmatprep.mubr.bf16.mxu0 %v3180_v5 }
  0x4a   :  { %2825 = vmatmul.mubr.bf16.gmra.mxu1 %v3392_v45 }
  0x4b   :  { %2828 = vmatprep.mubr.bf16.mxu1 %v3397_v46 }
  0x4d   :  { %521 = vmatmul.mubr.bf16.gmra.mxu0 %v3301_v24 }
  0x4e   :  { %530 = vmatprep.mubr.bf16.mxu0 %v3180_v5 }
  0x52   :  { %2829 = vmatmul.mubr.bf16.gmra.mxu1 %v3406_v47 }
  0x53   :  { %2832 = vmatprep.mubr.bf16.mxu1 %v3411_v48 }
  0x55   :  { %531 = vmatmul.mubr.bf16.gmra.mxu0 %v3312_v27 }
  0x56   :  { %540 = vmatprep.mubr.bf16.mxu0 %v3180_v5 }
  0x5a   :  { %2833 = vmatmul.mubr.bf16.gmra.mxu1 %v3420_v49 }
  0x5b   :  { %2836 = vmatprep.mubr.bf16.mxu1 %v3425_v50 }
  0x5d   :  { %541 = vmatmul.mubr.bf16.gmra.mxu0 %v3331_v32 }
  0x5e   :  { %550 = vmatprep.mubr.bf16.mxu0 %v3180_v5 }
  0x62   :  { %2837 = vmatmul.mubr.bf16.gmra.mxu1 %v3434_v51 }
  0x63   :  { %2840 = vmatprep.mubr.bf16.mxu1 %v3439_v52 }
  0x65   :  { %551 = vmatmul.mubr.bf16.gmra.mxu0 %v3342_v35 }
  0x66   :  { %560 = vmatprep.mubr.bf16.mxu0 %v3180_v5 }
  0x6a   :  { %2841 = vmatmul.mubr.bf16.gmra.mxu1 %v3448_v53 }
  0x6b   :  { %2844 = vmatprep.mubr.bf16.mxu1 %v3453_v54 }
  0x6d   :  { %561 = vmatmul.mubr.bf16.gmra.mxu0 %v3361_v40 }
  0x6e   :  { %570 = vmatprep.mubr.bf16.mxu0 %v3180_v5 }
  0x72   :  { %2845 = vmatmul.mubr.bf16.gmra.mxu1 %v3465_v56 }
  0x73   :  { %2848 = vmatprep.mubr.bf16.mxu1 %v3470_v57 }
  0x75   :  { %571 = vmatmul.mubr.bf16.gmra.mxu0 %v3366_v41 }
  0x76   :  { %580 = vmatprep.mubr.bf16.mxu0 %v3180_v5 }
  0x7a   :  { %2849 = vmatmul.mubr.bf16.gmra.mxu1 %v3479_v58 }
  0x7b   :  { %2852 = vmatprep.mubr.bf16.mxu1 %v3484_v59 }
  0x7d   :  { %581 = vmatmul.mubr.bf16.gmra.mxu0 %v3378_v43 }
  0x7e   :  { %590 = vmatprep.mubr.bf16.mxu0 %v3180_v5 }
  0x82   :  { %2853 = vmatmul.mubr.bf16.gmra.mxu1 %v3493_v60 }
  0x83   :  { %2856 = vmatprep.mubr.bf16.mxu1 %v3498_v61 }
  0x85   :  { %591 = vmatmul.mubr.bf16.gmra.mxu0 %v3383_v44 }
  0x86   :  { %600 = vmatprep.mubr.bf16.mxu0 %v3180_v5 }
  0x8a   :  { %2857 = vmatmul.mubr.bf16.gmra.mxu1 %v3507_v62 }
  0x8b   :  { %2860 = vmatprep.mubr.bf16.mxu1 %v3512_v63 }
  0x8d   :  { %601 = vmatmul.mubr.bf16.gmra.mxu0 %v3392_v45 }
  0x8e   :  { %610 = vmatprep.mubr.bf16.mxu0 %v3180_v5 }
  0x92   :  { %2861 = vmatmul.mubr.bf16.gmra.mxu1 %v3521_v0 }
  0x93   :  { %2864 = vmatprep.mubr.bf16.mxu1 %v3526_v1 }
  0x95   :  { %611 = vmatmul.mubr.bf16.gmra.mxu0 %v3397_v46 }
  0x96   :  { %620 = vmatprep.mubr.bf16.mxu0 %v3180_v5 }
  0x9a   :  { %2865 = vmatmul.mubr.bf16.gmra.mxu1 %v3535_v2 }
  0x9b   :  { %2884 = vmatprep.mubr.bf16.mxu1 %v3234_v4 }
  0x9d   :  { %621 = vmatmul.mubr.bf16.gmra.mxu0 %v3406_v47 }
  0x9e   :  { %630 = vmatprep.mubr.bf16.mxu0 %v3180_v5 }
  0xa2   :  { %2885 = vmatmul.mubr.bf16.vlgmr.msra.gmra.mxu1 %v3274_v17  ;;  %v3611_v17 = vld [vmem:[%s4273_s2] sm:$0x7]  ;;  %s3181_s2 = smov [#allocation2]  }
  0xa3   :  { %2888 = vmatprep.mubr.bf16.mxu1 %v3282_v19  ;;  %3015 = vmatpush3.bf16.msra.mxu1 %v3157_v55  ;;  %v3616_v19 = vrot.slane %v3611_v17, %v129_v15  ;;  %s2501_s26 = sshll.u32 %s3181_s2, 4  ;;  %s2502_s26 = int_to_ptr.vmem [resolvable:$true] %s2501_s26 }
  0xa4   :  { %s3158_s27 = scalar_lea.vmem %s2502_s26, 24576  ;;  %p3163_p1 = scmp.lt.s32.totalorder %s2502_s26, %s2502_s26 }
  0xa5   :  { %631 = vmatmul.mubr.bf16.gmra.mxu0 %v3411_v48  ;;  %p3159_p0 = scmp.ne.s32.totalorder %s2502_s26, %s3158_s27  ;;  %p3164_p2 = scmp.lt.s32.totalorder %s3158_s27, %s3158_s27 }
  0xa6   :  { %640 = vmatprep.mubr.bf16.mxu0 %v3180_v5 }
  0xa7   :  { %p3165_p3 = por %p3164_p2, %p3163_p1 }
  0xa9   :  { %p3166_p4 = pnand %p3165_p3, %p3159_p0 }
  0xaa   :  { %2889 = vmatmul.mubr.bf16.gmra.mxu1 %v3301_v24 }
  0xab   :  { %2892 = vmatprep.mubr.bf16.mxu1 %v3312_v27 }
  0xad   :  { %641 = vmatmul.mubr.bf16.gmra.mxu0 %v3420_v49 }
  0xae   :  { %650 = vmatprep.mubr.bf16.mxu0 %v3180_v5 }
  0xb2   :  { %2893 = vmatmul.mubr.bf16.gmra.mxu1 %v3331_v32 }
  0xb3   :  { %2896 = vmatprep.mubr.bf16.mxu1 %v3342_v35 }
  0xb5   :  { %651 = vmatmul.mubr.bf16.gmra.mxu0 %v3425_v50 }
  0xb6   :  { %660 = vmatprep.mubr.bf16.mxu0 %v3180_v5 }
  0xba   :  { %2897 = vmatmul.mubr.bf16.gmra.mxu1 %v3361_v40 }
  0xbb   :  { %2900 = vmatprep.mubr.bf16.mxu1 %v3366_v41 }
  0xbd   :  { %661 = vmatmul.mubr.bf16.gmra.mxu0 %v3434_v51 }
  0xbe   :  { %670 = vmatprep.mubr.bf16.mxu0 %v3180_v5 }
  0xc2   :  { %2901 = vmatmul.mubr.bf16.gmra.mxu1 %v3378_v43 }
  0xc3   :  { %2904 = vmatprep.mubr.bf16.mxu1 %v3383_v44 }
  0xc5   :  { %671 = vmatmul.mubr.bf16.gmra.mxu0 %v3439_v52 }
  0xc6   :  { %680 = vmatprep.mubr.bf16.mxu0 %v3180_v5 }
  0xca   :  { %2905 = vmatmul.mubr.bf16.gmra.mxu1 %v3392_v45 }
  0xcb   :  { %2908 = vmatprep.mubr.bf16.mxu1 %v3397_v46 }
  0xcd   :  { %681 = vmatmul.mubr.bf16.gmra.mxu0 %v3448_v53 }
  0xce   :  { %690 = vmatprep.mubr.bf16.mxu0 %v3180_v5 }
  0xd2   :  { %2909 = vmatmul.mubr.bf16.gmra.mxu1 %v3406_v47 }
  0xd3   :  { %2912 = vmatprep.mubr.bf16.mxu1 %v3411_v48 }
  0xd5   :  { %691 = vmatmul.mubr.bf16.gmra.mxu0 %v3453_v54 }
  0xd6   :  { %700 = vmatprep.mubr.bf16.mxu0 %v3180_v5 }
  0xda   :  { %2913 = vmatmul.mubr.bf16.gmra.mxu1 %v3420_v49 }
  0xdb   :  { %2916 = vmatprep.mubr.bf16.mxu1 %v3425_v50 }
  0xdd   :  { %701 = vmatmul.mubr.bf16.gmra.mxu0 %v3465_v56 }
  0xde   :  { %710 = vmatprep.mubr.bf16.mxu0 %v3180_v5 }
  0xe2   :  { %v3575_v3 = vpop.f32.mrf.mxu1  ;;  %2917 = vmatmul.mubr.bf16.gmra.mxu1 %v3434_v51 }
  0xe3   :  { %2920 = vmatprep.mubr.bf16.mxu1 %v3439_v52 }
  0xe4   :  { %v3579_v4 = vpop.f32.mrf.mxu1 }
  0xe5   :  { %711 = vmatmul.mubr.bf16.gmra.mxu0 %v3470_v57  ;;  %v3618_v20 = vpop.f32.mrf.mxu0 }
  0xe6   :  { %v3581_v6 = vpop.f32.mrf.mxu1  ;;  %720 = vmatprep.mubr.bf16.mxu0 %v3180_v5 }
  0xe7   :  { %v494_v22 = vpop.f32.mrf.mxu0 }
  0xe8   :  { %v3584_v7 = vpop.f32.mrf.mxu1  ;;  %v495_v24 = vadd.f32 %v494_v22, %v3616_v19 }
  0xe9   :  { %v3629_v25 = vpop.f32.mrf.mxu0 }
  0xea   :  { %v3587_v8 = vpop.f32.mrf.mxu1  ;;  %2921 = vmatmul.mubr.bf16.gmra.mxu1 %v3448_v53  ;;  %2304 = vst [vmem:[#allocation2 + $0x8] sm:$0xff] %v495_v24 }
  0xeb   :  { %2924 = vmatprep.mubr.bf16.mxu1 %v3453_v54  ;;  %v498_v27 = vpop.f32.mrf.mxu0 }
  0xec   :  { %v3591_v10 = vpop.f32.mrf.mxu1  ;;  %v499_v29 = vadd.f32 %v498_v27, %v3616_v19 }
  0xed   :  { %721 = vmatmul.mubr.bf16.gmra.mxu0 %v3479_v58 }
  0xee   :  { %v3593_v11 = vpop.f32.mrf.mxu1  ;;  %730 = vmatprep.mubr.bf16.mxu0 %v3180_v5  ;;  %2305 = vst [vmem:[#allocation2 + $0x20] sm:$0xff] %v499_v29 }
  0xf0   :  { %v3598_v13 = vpop.f32.mrf.mxu1 }
  0xf2   :  { %v3601_v14 = vpop.f32.mrf.mxu1  ;;  %2925 = vmatmul.mubr.bf16.gmra.mxu1 %v3465_v56 }
  0xf3   :  { %2928 = vmatprep.mubr.bf16.mxu1 %v3470_v57 }
  0xf4   :  { %v3606_v16 = vpop.f32.mrf.mxu1 }
  0xf5   :  { %731 = vmatmul.mubr.bf16.gmra.mxu0 %v3484_v59 }
  0xf6   :  { %v3613_v18 = vpop.f32.mrf.mxu1  ;;  %740 = vmatprep.mubr.bf16.mxu0 %v3180_v5 }
  0xf8   :  { %v3621_v21 = vpop.f32.mrf.mxu1 }
  0xfa   :  { %v3624_v23 = vpop.f32.mrf.mxu1  ;;  %2929 = vmatmul.mubr.bf16.gmra.mxu1 %v3479_v58 }
  0xfb   :  { %2932 = vmatprep.mubr.bf16.mxu1 %v3484_v59 }
  0xfc   :  { %v3631_v26 = vpop.f32.mrf.mxu1 }
  0xfd   :  { %v3636_v30 = vpop.f32.mrf.mxu0  ;;  %741 = vmatmul.mubr.bf16.gmra.mxu0 %v3493_v60 }
  0xfe   :  { %v3633_v28 = vpop.f32.mrf.mxu1  ;;  %750 = vmatprep.mubr.bf16.mxu0 %v3180_v5 }
  0xff   :  { %v504_v32 = vpop.f32.mrf.mxu0 }
 0x100   :  { %v3639_v31 = vpop.f32.mrf.mxu1  ;;  %v505_v34 = vadd.f32 %v504_v32, %v3616_v19 }
 0x101   :  { %v3647_v35 = vpop.f32.mrf.mxu0 }
 0x102   :  { %v3642_v33 = vpop.f32.mrf.mxu1  ;;  %2933 = vmatmul.mubr.bf16.gmra.mxu1 %v3493_v60  ;;  %2306 = vst [vmem:[#allocation2 + $0x38] sm:$0xff] %v505_v34 }
 0x103   :  { %2936 = vmatprep.mubr.bf16.mxu1 %v3498_v61  ;;  %v508_v37 = vpop.f32.mrf.mxu0 }
 0x104   :  { %v3649_v36 = vpop.f32.mrf.mxu1  ;;  %v509_v39 = vadd.f32 %v508_v37, %v3616_v19 }
 0x105   :  { %v3654_v40 = vpop.f32.mrf.mxu0  ;;  %751 = vmatmul.mubr.bf16.gmra.mxu0 %v3498_v61 }
 0x106   :  { %v3651_v38 = vpop.f32.mrf.mxu1  ;;  %2307 = vst [vmem:[#allocation2 + $0x50] sm:$0xff] %v509_v39  ;;  %760 = vmatprep.mubr.bf16.mxu0 %v3180_v5 }
 0x107   :  { %v514_v42 = vpop.f32.mrf.mxu0 }
 0x108   :  { %v3657_v41 = vpop.f32.mrf.mxu1  ;;  %v515_v44 = vadd.f32 %v514_v42, %v3616_v19 }
 0x109   :  { %v3665_v45 = vpop.f32.mrf.mxu0 }
 0x10a   :  { %v3660_v43 = vpop.f32.mrf.mxu1  ;;  %2937 = vmatmul.mubr.bf16.gmra.mxu1 %v3507_v62  ;;  %2308 = vst [vmem:[#allocation2 + $0x68] sm:$0xff] %v515_v44 }
 0x10b   :  { %2940 = vmatprep.mubr.bf16.mxu1 %v3512_v63  ;;  %v518_v47 = vpop.f32.mrf.mxu0 }
 0x10c   :  { %v3667_v46 = vpop.f32.mrf.mxu1  ;;  %v519_v49 = vadd.f32 %v518_v47, %v3616_v19 }
 0x10d   :  { %v3672_v50 = vpop.f32.mrf.mxu0  ;;  %761 = vmatmul.mubr.bf16.gmra.mxu0 %v3507_v62 }
 0x10e   :  { %v3669_v48 = vpop.f32.mrf.mxu1  ;;  %2309 = vst [vmem:[#allocation2 + $0x80] sm:$0xff] %v519_v49  ;;  %770 = vmatprep.mubr.bf16.mxu0 %v3180_v5 }
 0x10f   :  { %v524_v52 = vpop.f32.mrf.mxu0 }
 0x110   :  { %v3675_v51 = vpop.f32.mrf.mxu1  ;;  %v525_v54 = vadd.f32 %v524_v52, %v3616_v19 }
 0x111   :  { %4278 = vst [vmem:[#allocation5_spill] sm:$0xff] %v3675_v51  ;;  %v3683_v55 = vpop.f32.mrf.mxu0 }
 0x112   :  { %v3678_v53 = vpop.f32.mrf.mxu1  ;;  %2941 = vmatmul.mubr.bf16.gmra.mxu1 %v3521_v0  ;;  %2310 = vst [vmem:[#allocation2 + $0x98] sm:$0xff] %v525_v54 }
 0x113   :  { %4279 = vst [vmem:[#allocation6_spill] sm:$0xff] %v3678_v53  ;;  %2944 = vmatprep.mubr.bf16.mxu1 %v3526_v1  ;;  %v528_v57 = vpop.f32.mrf.mxu0 }
 0x114   :  { %v3685_v56 = vpop.f32.mrf.mxu1  ;;  %v529_v59 = vadd.f32 %v528_v57, %v3616_v19 }
 0x115   :  { %4280 = vst [vmem:[#allocation7_spill] sm:$0xff] %v3685_v56  ;;  %v3690_v60 = vpop.f32.mrf.mxu0  ;;  %771 = vmatmul.mubr.bf16.gmra.mxu0 %v3512_v63 }
 0x116   :  { %v3687_v58 = vpop.f32.mrf.mxu1  ;;  %2311 = vst [vmem:[#allocation2 + $0xb0] sm:$0xff] %v529_v59  ;;  %780 = vmatprep.mubr.bf16.mxu0 %v3180_v5 }
 0x117   :  { %4281 = vst [vmem:[#allocation8_spill] sm:$0xff] %v3687_v58  ;;  %v534_v62 = vpop.f32.mrf.mxu0 }
 0x118   :  { %v3693_v61 = vpop.f32.mrf.mxu1  ;;  %v535_v15 = vadd.f32 %v534_v62, %v3616_v19 }
 0x119   :  { %4282 = vst [vmem:[#allocation9_spill] sm:$0xff] %v3693_v61  ;;  %v3700_v22 = vpop.f32.mrf.mxu0 }
 0x11a   :  { %v3696_v9 = vpop.f32.mrf.mxu1  ;;  %2945 = vmatmul.mubr.bf16.gmra.mxu1 %v3535_v2  ;;  %2312 = vst [vmem:[#allocation2 + $0xc8] sm:$0xff] %v535_v15 }
 0x11b   :  { %4283 = vst [vmem:[#allocation10_spill] sm:$0xff] %v3696_v9  ;;  %v538_v27 = vpop.f32.mrf.mxu0 }
 0x11c   :  { %v3702_v24 = vpop.f32.mrf.mxu1  ;;  %v539_v63 = vadd.f32 %v538_v27, %v3616_v19 }
 0x11d   :  { %4284 = vst [vmem:[#allocation11_spill] sm:$0xff] %v3702_v24  ;;  %v3707_v32 = vpop.f32.mrf.mxu0  ;;  %781 = vmatmul.mubr.bf16.gmra.mxu0 %v3521_v0 }
 0x11e   :  { %v3704_v29 = vpop.f32.mrf.mxu1  ;;  %2313 = vst [vmem:[#allocation2 + $0xe0] sm:$0xff] %v539_v63  ;;  %790 = vmatprep.mubr.bf16.mxu0 %v3180_v5 }
 0x11f   :  { %4285 = vst [vmem:[#allocation12_spill] sm:$0xff] %v3704_v29  ;;  %v544_v37 = vpop.f32.mrf.mxu0 }
 0x120   :  { %v3710_v34 = vpop.f32.mrf.mxu1  ;;  %v545_v42 = vadd.f32 %v544_v37, %v3616_v19 }
 0x121   :  { %4286 = vst [vmem:[#allocation13_spill] sm:$0xff] %v3710_v34  ;;  %v3716_v44 = vpop.f32.mrf.mxu0 }
 0x122   :  { %v3713_v39 = vpop.f32.mrf.mxu1  ;;  %2314 = vst [vmem:[#allocation2 + $0xf8] sm:$0xff] %v545_v42 }
 0x123   :  { %4287 = vst [vmem:[#allocation14_spill] sm:$0xff] %v3713_v39  ;;  %v548_v49 = vpop.f32.mrf.mxu0 }
 0x124   :  { %v3718_v47 = vpop.f32.mrf.mxu1  ;;  %v549_v0 = vadd.f32 %v548_v49, %v3616_v19 }
 0x125   :  { %4288 = vst [vmem:[#allocation15_spill] sm:$0xff] %v3718_v47  ;;  %v3723_v54 = vpop.f32.mrf.mxu0  ;;  %791 = vmatmul.mubr.bf16.gmra.mxu0 %v3526_v1 }
 0x126   :  { %v3720_v52 = vpop.f32.mrf.mxu1  ;;  %2315 = vst [vmem:[#allocation2 + $0x110] sm:$0xff] %v549_v0  ;;  %800 = vmatprep.mubr.bf16.mxu0 %v3180_v5 }
 0x127   :  { %4289 = vst [vmem:[#allocation16_spill] sm:$0xff] %v3720_v52  ;;  %v554_v59 = vpop.f32.mrf.mxu0 }
 0x128   :  { %v3726_v57 = vpop.f32.mrf.mxu1  ;;  %v555_v15 = vadd.f32 %v554_v59, %v3616_v19 }
 0x129   :  { %4290 = vst [vmem:[#allocation17_spill] sm:$0xff] %v3726_v57  ;;  %v3732_v27 = vpop.f32.mrf.mxu0 }
 0x12a   :  { %v3729_v62 = vpop.f32.mrf.mxu1  ;;  %2316 = vst [vmem:[#allocation2 + $0x128] sm:$0xff] %v555_v15 }
 0x12b   :  { %4291 = vst [vmem:[#allocation18_spill] sm:$0xff] %v3729_v62  ;;  %v558_v37 = vpop.f32.mrf.mxu0 }
 0x12c   :  { %v3734_v63 = vpop.f32.mrf.mxu1  ;;  %v559_v1 = vadd.f32 %v558_v37, %v3616_v19 }
 0x12d   :  { %4292 = vst [vmem:[#allocation19_spill] sm:$0xff] %v3734_v63  ;;  %v3739_v49 = vpop.f32.mrf.mxu0  ;;  %801 = vmatmul.mubr.bf16.gmra.mxu0 %v3535_v2 }
 0x12e   :  { %v3736_v42 = vpop.f32.mrf.mxu1  ;;  %2317 = vst [vmem:[#allocation2 + $0x140] sm:$0xff] %v559_v1 }
 0x12f   :  { %4293 = vst [vmem:[#allocation20_spill] sm:$0xff] %v3736_v42  ;;  %v564_v0 = vpop.f32.mrf.mxu0 }
 0x130   :  { %v3742_v5 = vpop.f32.mrf.mxu1  ;;  %v565_v59 = vadd.f32 %v564_v0, %v3616_v19 }
 0x131   :  { %4294 = vst [vmem:[#allocation21_spill] sm:$0xff] %v3742_v5  ;;  %v3747_v57 = vpop.f32.mrf.mxu0 }
 0x132   :  { %v3744_v62 = vpop.f32.mrf.mxu1  ;;  %2318 = vst [vmem:[#allocation2 + $0x158] sm:$0xff] %v565_v59 }
 0x133   :  { %4295 = vst [vmem:[#allocation22_spill] sm:$0xff] %v3744_v62  ;;  %v568_v42 = vpop.f32.mrf.mxu0 }
 0x134   :  { %v3749_v15 = vpop.f32.mrf.mxu1  ;;  %v569_v37 = vadd.f32 %v568_v42, %v3616_v19 }
 0x135   :  { %4296 = vst [vmem:[#allocation23_spill] sm:$0xff] %v3749_v15  ;;  %v3754_v52 = vpop.f32.mrf.mxu0 }
 0x136   :  { %v3751_v63 = vpop.f32.mrf.mxu1  ;;  %2319 = vst [vmem:[#allocation2 + $0x170] sm:$0xff] %v569_v37 }
 0x137   :  { %4297 = vst [vmem:[#allocation24_spill] sm:$0xff] %v3751_v63  ;;  %v574_v1 = vpop.f32.mrf.mxu0 }
 0x138   :  { %v3756_v2 = vpop.f32.mrf.mxu1  ;;  %v575_v0 = vadd.f32 %v574_v1, %v3616_v19 }
 0x139   :  { %4298 = vst [vmem:[#allocation25_spill] sm:$0xff] %v3756_v2  ;;  %v3761_v62 = vpop.f32.mrf.mxu0 }
 0x13a   :  { %v3758_v5 = vpop.f32.mrf.mxu1  ;;  %2320 = vst [vmem:[#allocation2 + $0x188] sm:$0xff] %v575_v0 }
 0x13b   :  { %4299 = vst [vmem:[#allocation26_spill] sm:$0xff] %v3758_v5  ;;  %v578_v59 = vpop.f32.mrf.mxu0 }
 0x13c   :  { %v3763_v47 = vpop.f32.mrf.mxu1  ;;  %v579_v42 = vadd.f32 %v578_v59, %v3616_v19 }
 0x13d   :  { %4300 = vst [vmem:[#allocation27_spill] sm:$0xff] %v3763_v47  ;;  %v3768_v63 = vpop.f32.mrf.mxu0 }
 0x13e   :  { %v3765_v15 = vpop.f32.mrf.mxu1  ;;  %2321 = vst [vmem:[#allocation2 + $0x1a0] sm:$0xff] %v579_v42 }
 0x13f   :  { %4301 = vst [vmem:[#allocation28_spill] sm:$0xff] %v3765_v15  ;;  %v584_v37 = vpop.f32.mrf.mxu0 }
 0x140   :  { %v3770_v39 = vpop.f32.mrf.mxu1  ;;  %v585_v1 = vadd.f32 %v584_v37, %v3616_v19 }
 0x141   :  { %4302 = vst [vmem:[#allocation29_spill] sm:$0xff] %v3770_v39  ;;  %v3775_v5 = vpop.f32.mrf.mxu0 }
 0x142   :  { %v3772_v2 = vpop.f32.mrf.mxu1  ;;  %2322 = vst [vmem:[#allocation2 + $0x1b8] sm:$0xff] %v585_v1 }
 0x143   :  { %4303 = vst [vmem:[#allocation30_spill] sm:$0xff] %v3772_v2  ;;  %v588_v0 = vpop.f32.mrf.mxu0 }
 0x144   :  { %v3777_v34 = vpop.f32.mrf.mxu1  ;;  %v589_v59 = vadd.f32 %v588_v0, %v3616_v19 }
 0x145   :  { %4304 = vst [vmem:[#allocation31_spill] sm:$0xff] %v3777_v34  ;;  %v3782_v15 = vpop.f32.mrf.mxu0 }
 0x146   :  { %v3779_v47 = vpop.f32.mrf.mxu1  ;;  %2323 = vst [vmem:[#allocation2 + $0x1d0] sm:$0xff] %v589_v59 }
 0x147   :  { %4305 = vst [vmem:[#allocation32_spill] sm:$0xff] %v3779_v47  ;;  %v594_v42 = vpop.f32.mrf.mxu0 }
 0x148   :  { %v3784_v29 = vpop.f32.mrf.mxu1  ;;  %v595_v37 = vadd.f32 %v594_v42, %v3616_v19 }
 0x149   :  { %4306 = vst [vmem:[#allocation33_spill] sm:$0xff] %v3784_v29  ;;  %v3789_v2 = vpop.f32.mrf.mxu0 }
 0x14a   :  { %v3786_v39 = vpop.f32.mrf.mxu1  ;;  %4308 = vst [vmem:[#allocation35_spill] sm:$0xff] %v3789_v2  ;;  %2324 = vst [vmem:[#allocation2 + $0x1e8] sm:$0xff] %v595_v37 }
 0x14b   :  { %4307 = vst [vmem:[#allocation34_spill] sm:$0xff] %v3786_v39  ;;  %v598_v1 = vpop.f32.mrf.mxu0 }
 0x14c   :  { %v3791_v24 = vpop.f32.mrf.mxu1  ;;  %v599_v0 = vadd.f32 %v598_v1, %v3616_v19 }
 0x14d   :  { %4309 = vst [vmem:[#allocation36_spill] sm:$0xff] %v3791_v24  ;;  %v3796_v47 = vpop.f32.mrf.mxu0 }
 0x14e   :  { %v3793_v34 = vpop.f32.mrf.mxu1  ;;  %2325 = vst [vmem:[#allocation2 + $0x200] sm:$0xff] %v599_v0 }
 0x14f   :  { %4310 = vst [vmem:[#allocation37_spill] sm:$0xff] %v3793_v34  ;;  %v604_v59 = vpop.f32.mrf.mxu0 }
 0x150   :  { %v3798_v9 = vpop.f32.mrf.mxu1  ;;  %v605_v42 = vadd.f32 %v604_v59, %v3616_v19 }
 0x151   :  { %4311 = vst [vmem:[#allocation38_spill] sm:$0xff] %v3798_v9  ;;  %v3803_v39 = vpop.f32.mrf.mxu0 }
 0x152   :  { %v3800_v29 = vpop.f32.mrf.mxu1  ;;  %2326 = vst [vmem:[#allocation2 + $0x218] sm:$0xff] %v605_v42 }
 0x153   :  { %4312 = vst [vmem:[#allocation39_spill] sm:$0xff] %v3800_v29  ;;  %v608_v37 = vpop.f32.mrf.mxu0 }
 0x154   :  { %v3805_v61 = vpop.f32.mrf.mxu1  ;;  %v609_v1 = vadd.f32 %v608_v37, %v3616_v19 }
 0x155   :  { %4313 = vst [vmem:[#allocation40_spill] sm:$0xff] %v3805_v61  ;;  %v3810_v34 = vpop.f32.mrf.mxu0 }
 0x156   :  { %v3807_v24 = vpop.f32.mrf.mxu1  ;;  %4315 = vst [vmem:[#allocation42_spill] sm:$0xff] %v3810_v34  ;;  %2327 = vst [vmem:[#allocation2 + $0x230] sm:$0xff] %v609_v1 }
 0x157   :  { %4314 = vst [vmem:[#allocation41_spill] sm:$0xff] %v3807_v24  ;;  %v614_v0 = vpop.f32.mrf.mxu0 }
 0x158   :  { %v3812_v58 = vpop.f32.mrf.mxu1  ;;  %v615_v59 = vadd.f32 %v614_v0, %v3616_v19 }
 0x159   :  { %4316 = vst [vmem:[#allocation43_spill] sm:$0xff] %v3812_v58  ;;  %v3817_v29 = vpop.f32.mrf.mxu0 }
 0x15a   :  { %v3814_v9 = vpop.f32.mrf.mxu1  ;;  %4318 = vst [vmem:[#allocation45_spill] sm:$0xff] %v3817_v29  ;;  %2328 = vst [vmem:[#allocation2 + $0x248] sm:$0xff] %v615_v59 }
 0x15b   :  { %4317 = vst [vmem:[#allocation44_spill] sm:$0xff] %v3814_v9  ;;  %v618_v42 = vpop.f32.mrf.mxu0 }
 0x15c   :  { %v3819_v56 = vpop.f32.mrf.mxu1  ;;  %v619_v37 = vadd.f32 %v618_v42, %v3616_v19 }
 0x15d   :  { %4319 = vst [vmem:[#allocation46_spill] sm:$0xff] %v3819_v56  ;;  %v3824_v24 = vpop.f32.mrf.mxu0 }
 0x15e   :  { %v3821_v61 = vpop.f32.mrf.mxu1  ;;  %4321 = vst [vmem:[#allocation48_spill] sm:$0xff] %v3824_v24  ;;  %2329 = vst [vmem:[#allocation2 + $0x260] sm:$0xff] %v619_v37 }
 0x15f   :  { %4320 = vst [vmem:[#allocation47_spill] sm:$0xff] %v3821_v61  ;;  %v624_v1 = vpop.f32.mrf.mxu0 }
 0x160   :  { %v3826_v34 = vpop.f32.mrf.mxu1  ;;  %v625_v9 = vadd.f32 %v624_v1, %v3616_v19 }
 0x161   :  { %4322 = vst [vmem:[#allocation49_spill] sm:$0xff] %v3826_v34  ;;  %v3829_v0 = vpop.f32.mrf.mxu0 }
 0x162   :  { %v2886_v58 = vpop.f32.mrf.mxu1  ;;  %2330 = vst [vmem:[#allocation2 + $0x278] sm:$0xff] %v625_v9 }
 0x163   :  { %v628_v56 = vpop.f32.mrf.mxu0 }
 0x164   :  { %v1198_v29 = vpop.f32.mrf.mxu1  ;;  %v629_v53 = vadd.f32 %v628_v56, %v3616_v19 }
 0x165   :  { %v3832_v61 = vpop.f32.mrf.mxu0 }
 0x166   :  { %v2887_v59 = vpop.f32.mrf.mxu1  ;;  %4323 = vst [vmem:[#allocation50_spill] sm:$0xff] %v3832_v61  ;;  %2331 = vst [vmem:[#allocation2 + $0x290] sm:$0xff] %v629_v53 }
 0x167   :  { %v634_v34 = vpop.f32.mrf.mxu0  ;;  %v1454_v37 = vpack.c.bf16 %v2887_v59, %v2886_v58 }
 0x168   :  { %v1201_v42 = vpop.f32.mrf.mxu1  ;;  %v635_v51 = vadd.f32 %v634_v34, %v3616_v19 }
 0x169   :  { %v1453_v24 = vpack.c.bf16 %v1201_v42, %v1198_v29  ;;  %v3837_v9 = vpop.f32.mrf.mxu0 }
 0x16a   :  { %v2890_v2 = vpop.f32.mrf.mxu1  ;;  %4324 = vst [vmem:[#allocation51_spill] sm:$0xff] %v3837_v9  ;;  %2332 = vst [vmem:[#allocation2 + $0x2a8] sm:$0xff] %v635_v51 }
 0x16b   :  { %2950 = vmatprep.mubr.msk.bf16.mxu0 %vm1493_vm0, %v1453_v24  ;;  %3016 = vmatprep.mubr.msk.bf16.mxu1 %vm1493_vm0, %v1453_v24  ;;  %v638_v56 = vpop.f32.mrf.mxu0 }
 0x16c   :  { %v1214_v1 = vpop.f32.mrf.mxu1  ;;  %2951 = vmatmul.mubr.msk.bf16.vlgmr.msra.gmra.mxu0 %vm1493_vm0, %v1454_v37  ;;  %3017 = vmatmul.mubr.msk.bf16.vlgmr.msra.gmra.mxu1 %vm1493_vm0, %v1454_v37  ;;  %v639_v29 = vadd.f32 %v638_v56, %v3616_v19 }
 0x16d   :  { %v3842_v58 = vpop.f32.mrf.mxu0 }
 0x16e   :  { %v2891_v53 = vpop.f32.mrf.mxu1  ;;  %4325 = vst [vmem:[#allocation52_spill] sm:$0xff] %v3842_v58  ;;  %2333 = vst [vmem:[#allocation2 + $0x2c0] sm:$0xff] %v639_v29 }
 0x16f   :  { %v644_v42 = vpop.f32.mrf.mxu0  ;;  %v1456_v61 = vpack.c.bf16 %v2891_v53, %v2890_v2 }
 0x170   :  { %v1217_v59 = vpop.f32.mrf.mxu1  ;;  %v645_v9 = vadd.f32 %v644_v42, %v3616_v19 }
 0x171   :  { %v1455_v34 = vpack.c.bf16 %v1217_v59, %v1214_v1  ;;  %v3847_v37 = vpop.f32.mrf.mxu0 }
 0x172   :  { %v2894_v24 = vpop.f32.mrf.mxu1  ;;  %4326 = vst [vmem:[#allocation53_spill] sm:$0xff] %v3847_v37  ;;  %2334 = vst [vmem:[#allocation2 + $0x2d8] sm:$0xff] %v645_v9 }
 0x173   :  { %2954 = vmatprep.mubr.msk.bf16.mxu0 %vm1493_vm0, %v1455_v34  ;;  %3020 = vmatprep.mubr.msk.bf16.mxu1 %vm1493_vm0, %v1455_v34  ;;  %v648_v56 = vpop.f32.mrf.mxu0 }
 0x174   :  { %v1230_v51 = vpop.f32.mrf.mxu1  ;;  %2955 = vmatmul.mubr.msk.bf16.gmra.mxu0 %vm1493_vm0, %v1456_v61  ;;  %3021 = vmatmul.mubr.msk.bf16.gmra.mxu1 %vm1493_vm0, %v1456_v61  ;;  %v649_v1 = vadd.f32 %v648_v56, %v3616_v19 }
 0x175   :  { %v3852_v2 = vpop.f32.mrf.mxu0 }
 0x176   :  { %v2895_v29 = vpop.f32.mrf.mxu1  ;;  %4327 = vst [vmem:[#allocation54_spill] sm:$0xff] %v3852_v2  ;;  %2335 = vst [vmem:[#allocation2 + $0x2f0] sm:$0xff] %v649_v1 }
 0x177   :  { %v654_v42 = vpop.f32.mrf.mxu0  ;;  %v1458_v58 = vpack.c.bf16 %v2895_v29, %v2894_v24 }
 0x178   :  { %v1233_v53 = vpop.f32.mrf.mxu1  ;;  %v655_v37 = vadd.f32 %v654_v42, %v3616_v19 }
 0x179   :  { %v1457_v59 = vpack.c.bf16 %v1233_v53, %v1230_v51  ;;  %v3857_v61 = vpop.f32.mrf.mxu0 }
 0x17a   :  { %v2898_v34 = vpop.f32.mrf.mxu1  ;;  %4328 = vst [vmem:[#allocation55_spill] sm:$0xff] %v3857_v61  ;;  %2336 = vst [vmem:[#allocation2 + $0x308] sm:$0xff] %v655_v37 }
 0x17b   :  { %2958 = vmatprep.mubr.msk.bf16.mxu0 %vm1493_vm0, %v1457_v59  ;;  %3024 = vmatprep.mubr.msk.bf16.mxu1 %vm1493_vm0, %v1457_v59  ;;  %v658_v56 = vpop.f32.mrf.mxu0 }
 0x17c   :  { %v1246_v9 = vpop.f32.mrf.mxu1  ;;  %2959 = vmatmul.mubr.msk.bf16.gmra.mxu0 %vm1493_vm0, %v1458_v58  ;;  %3025 = vmatmul.mubr.msk.bf16.gmra.mxu1 %vm1493_vm0, %v1458_v58  ;;  %v659_v51 = vadd.f32 %v658_v56, %v3616_v19 }
 0x17d   :  { %v3862_v24 = vpop.f32.mrf.mxu0 }
 0x17e   :  { %v2899_v1 = vpop.f32.mrf.mxu1  ;;  %4329 = vst [vmem:[#allocation56_spill] sm:$0xff] %v3862_v24  ;;  %2337 = vst [vmem:[#allocation2 + $0x320] sm:$0xff] %v659_v51 }
 0x17f   :  { %v664_v42 = vpop.f32.mrf.mxu0  ;;  %v1460_v2 = vpack.c.bf16 %v2899_v1, %v2898_v34 }
 0x180   :  { %v1249_v29 = vpop.f32.mrf.mxu1  ;;  %v665_v61 = vadd.f32 %v664_v42, %v3616_v19 }
 0x181   :  { %v1459_v53 = vpack.c.bf16 %v1249_v29, %v1246_v9  ;;  %v3867_v58 = vpop.f32.mrf.mxu0 }
 0x182   :  { %v2902_v59 = vpop.f32.mrf.mxu1  ;;  %4330 = vst [vmem:[#allocation57_spill] sm:$0xff] %v3867_v58  ;;  %2338 = vst [vmem:[#allocation2 + $0x338] sm:$0xff] %v665_v61 }
 0x183   :  { %2962 = vmatprep.mubr.msk.bf16.mxu0 %vm1493_vm0, %v1459_v53  ;;  %3028 = vmatprep.mubr.msk.bf16.mxu1 %vm1493_vm0, %v1459_v53  ;;  %v668_v56 = vpop.f32.mrf.mxu0 }
 0x184   :  { %v1262_v37 = vpop.f32.mrf.mxu1  ;;  %2963 = vmatmul.mubr.msk.bf16.gmra.mxu0 %vm1493_vm0, %v1460_v2  ;;  %3029 = vmatmul.mubr.msk.bf16.gmra.mxu1 %vm1493_vm0, %v1460_v2  ;;  %v669_v9 = vadd.f32 %v668_v56, %v3616_v19 }
 0x185   :  { %v3872_v34 = vpop.f32.mrf.mxu0 }
 0x186   :  { %v2903_v51 = vpop.f32.mrf.mxu1  ;;  %4331 = vst [vmem:[#allocation58_spill] sm:$0xff] %v3872_v34  ;;  %2339 = vst [vmem:[#allocation2 + $0x350] sm:$0xff] %v669_v9 }
 0x187   :  { %v674_v42 = vpop.f32.mrf.mxu0  ;;  %v1462_v24 = vpack.c.bf16 %v2903_v51, %v2902_v59 }
 0x188   :  { %v1265_v1 = vpop.f32.mrf.mxu1  ;;  %v675_v58 = vadd.f32 %v674_v42, %v3616_v19 }
 0x189   :  { %v1461_v29 = vpack.c.bf16 %v1265_v1, %v1262_v37  ;;  %v3877_v2 = vpop.f32.mrf.mxu0 }
 0x18a   :  { %v2906_v53 = vpop.f32.mrf.mxu1  ;;  %4332 = vst [vmem:[#allocation59_spill] sm:$0xff] %v3877_v2  ;;  %2340 = vst [vmem:[#allocation2 + $0x368] sm:$0xff] %v675_v58 }
 0x18b   :  { %2966 = vmatprep.mubr.msk.bf16.mxu0 %vm1493_vm0, %v1461_v29  ;;  %3032 = vmatprep.mubr.msk.bf16.mxu1 %vm1493_vm0, %v1461_v29  ;;  %v678_v56 = vpop.f32.mrf.mxu0 }
 0x18c   :  { %v1278_v61 = vpop.f32.mrf.mxu1  ;;  %2967 = vmatmul.mubr.msk.bf16.gmra.mxu0 %vm1493_vm0, %v1462_v24  ;;  %3033 = vmatmul.mubr.msk.bf16.gmra.mxu1 %vm1493_vm0, %v1462_v24  ;;  %v679_v37 = vadd.f32 %v678_v56, %v3616_v19 }
 0x18d   :  { %v3882_v59 = vpop.f32.mrf.mxu0 }
 0x18e   :  { %v2907_v9 = vpop.f32.mrf.mxu1  ;;  %4333 = vst [vmem:[#allocation60_spill] sm:$0xff] %v3882_v59  ;;  %2341 = vst [vmem:[#allocation2 + $0x380] sm:$0xff] %v679_v37 }
 0x18f   :  { %v684_v42 = vpop.f32.mrf.mxu0  ;;  %v1464_v34 = vpack.c.bf16 %v2907_v9, %v2906_v53 }
 0x190   :  { %v1281_v51 = vpop.f32.mrf.mxu1  ;;  %v685_v2 = vadd.f32 %v684_v42, %v3616_v19 }
 0x191   :  { %v1463_v1 = vpack.c.bf16 %v1281_v51, %v1278_v61  ;;  %v3887_v24 = vpop.f32.mrf.mxu0 }
 0x192   :  { %v2910_v29 = vpop.f32.mrf.mxu1  ;;  %4334 = vst [vmem:[#allocation61_spill] sm:$0xff] %v3887_v24  ;;  %2342 = vst [vmem:[#allocation2 + $0x398] sm:$0xff] %v685_v2 }
 0x193   :  { %2970 = vmatprep.mubr.msk.bf16.mxu0 %vm1493_vm0, %v1463_v1  ;;  %3036 = vmatprep.mubr.msk.bf16.mxu1 %vm1493_vm0, %v1463_v1  ;;  %v688_v56 = vpop.f32.mrf.mxu0 }
 0x194   :  { %v1294_v58 = vpop.f32.mrf.mxu1  ;;  %2971 = vmatmul.mubr.msk.bf16.gmra.mxu0 %vm1493_vm0, %v1464_v34  ;;  %3037 = vmatmul.mubr.msk.bf16.gmra.mxu1 %vm1493_vm0, %v1464_v34  ;;  %v689_v61 = vadd.f32 %v688_v56, %v3616_v19 }
 0x195   :  { %v3892_v53 = vpop.f32.mrf.mxu0 }
 0x196   :  { %v2911_v37 = vpop.f32.mrf.mxu1  ;;  %4335 = vst [vmem:[#allocation62_spill] sm:$0xff] %v3892_v53  ;;  %2343 = vst [vmem:[#allocation2 + $0x3b0] sm:$0xff] %v689_v61 }
 0x197   :  { %v694_v42 = vpop.f32.mrf.mxu0  ;;  %v1466_v59 = vpack.c.bf16 %v2911_v37, %v2910_v29 }
 0x198   :  { %v1297_v9 = vpop.f32.mrf.mxu1  ;;  %v695_v24 = vadd.f32 %v694_v42, %v3616_v19 }
 0x199   :  { %v1465_v51 = vpack.c.bf16 %v1297_v9, %v1294_v58  ;;  %v3897_v34 = vpop.f32.mrf.mxu0 }
 0x19a   :  { %v2914_v1 = vpop.f32.mrf.mxu1  ;;  %4336 = vst [vmem:[#allocation63_spill] sm:$0xff] %v3897_v34  ;;  %2344 = vst [vmem:[#allocation2 + $0x3c8] sm:$0xff] %v695_v24 }
 0x19b   :  { %2974 = vmatprep.mubr.msk.bf16.mxu0 %vm1493_vm0, %v1465_v51  ;;  %3040 = vmatprep.mubr.msk.bf16.mxu1 %vm1493_vm0, %v1465_v51  ;;  %v698_v56 = vpop.f32.mrf.mxu0 }
 0x19c   :  { %v1310_v2 = vpop.f32.mrf.mxu1  ;;  %2975 = vmatmul.mubr.msk.bf16.gmra.mxu0 %vm1493_vm0, %v1466_v59  ;;  %3041 = vmatmul.mubr.msk.bf16.gmra.mxu1 %vm1493_vm0, %v1466_v59  ;;  %v699_v58 = vadd.f32 %v698_v56, %v3616_v19 }
 0x19d   :  { %v3902_v29 = vpop.f32.mrf.mxu0 }
 0x19e   :  { %v2915_v61 = vpop.f32.mrf.mxu1  ;;  %4337 = vst [vmem:[#allocation64_spill] sm:$0xff] %v3902_v29  ;;  %2345 = vst [vmem:[#allocation2 + $0x3e0] sm:$0xff] %v699_v58 }
 0x19f   :  { %v704_v42 = vpop.f32.mrf.mxu0  ;;  %v1468_v53 = vpack.c.bf16 %v2915_v61, %v2914_v1 }
 0x1a0   :  { %v1313_v37 = vpop.f32.mrf.mxu1  ;;  %v705_v34 = vadd.f32 %v704_v42, %v3616_v19 }
 0x1a1   :  { %v1467_v9 = vpack.c.bf16 %v1313_v37, %v1310_v2  ;;  %v3907_v59 = vpop.f32.mrf.mxu0 }
 0x1a2   :  { %v2918_v51 = vpop.f32.mrf.mxu1  ;;  %4338 = vst [vmem:[#allocation65_spill] sm:$0xff] %v3907_v59  ;;  %2346 = vst [vmem:[#allocation2 + $0x3f8] sm:$0xff] %v705_v34 }
 0x1a3   :  { %2978 = vmatprep.mubr.msk.bf16.mxu0 %vm1493_vm0, %v1467_v9  ;;  %3044 = vmatprep.mubr.msk.bf16.mxu1 %vm1493_vm0, %v1467_v9  ;;  %v708_v56 = vpop.f32.mrf.mxu0 }
 0x1a4   :  { %v1326_v24 = vpop.f32.mrf.mxu1  ;;  %2979 = vmatmul.mubr.msk.bf16.gmra.mxu0 %vm1493_vm0, %v1468_v53  ;;  %3045 = vmatmul.mubr.msk.bf16.gmra.mxu1 %vm1493_vm0, %v1468_v53  ;;  %v709_v2 = vadd.f32 %v708_v56, %v3616_v19 }
 0x1a5   :  { %v3912_v1 = vpop.f32.mrf.mxu0 }
 0x1a6   :  { %v2919_v58 = vpop.f32.mrf.mxu1  ;;  %4339 = vst [vmem:[#allocation66_spill] sm:$0xff] %v3912_v1  ;;  %2347 = vst [vmem:[#allocation2 + $0x410] sm:$0xff] %v709_v2 }
 0x1a7   :  { %v714_v42 = vpop.f32.mrf.mxu0  ;;  %v1470_v29 = vpack.c.bf16 %v2919_v58, %v2918_v51 }
 0x1a8   :  { %v1329_v61 = vpop.f32.mrf.mxu1  ;;  %v715_v59 = vadd.f32 %v714_v42, %v3616_v19 }
 0x1a9   :  { %v1469_v37 = vpack.c.bf16 %v1329_v61, %v1326_v24  ;;  %v3917_v53 = vpop.f32.mrf.mxu0 }
 0x1aa   :  { %v2922_v9 = vpop.f32.mrf.mxu1  ;;  %4340 = vst [vmem:[#allocation67_spill] sm:$0xff] %v3917_v53  ;;  %2348 = vst [vmem:[#allocation2 + $0x428] sm:$0xff] %v715_v59 }
 0x1ab   :  { %2982 = vmatprep.mubr.msk.bf16.mxu0 %vm1493_vm0, %v1469_v37  ;;  %3048 = vmatprep.mubr.msk.bf16.mxu1 %vm1493_vm0, %v1469_v37  ;;  %v718_v56 = vpop.f32.mrf.mxu0 }
 0x1ac   :  { %v1342_v34 = vpop.f32.mrf.mxu1  ;;  %2983 = vmatmul.mubr.msk.bf16.gmra.mxu0 %vm1493_vm0, %v1470_v29  ;;  %3049 = vmatmul.mubr.msk.bf16.gmra.mxu1 %vm1493_vm0, %v1470_v29  ;;  %v719_v24 = vadd.f32 %v718_v56, %v3616_v19 }
 0x1ad   :  { %v3922_v51 = vpop.f32.mrf.mxu0 }
 0x1ae   :  { %v2923_v2 = vpop.f32.mrf.mxu1  ;;  %4341 = vst [vmem:[#allocation68_spill] sm:$0xff] %v3922_v51  ;;  %2349 = vst [vmem:[#allocation2 + $0x440] sm:$0xff] %v719_v24 }
 0x1af   :  { %v724_v42 = vpop.f32.mrf.mxu0  ;;  %v1472_v1 = vpack.c.bf16 %v2923_v2, %v2922_v9 }
 0x1b0   :  { %v1345_v58 = vpop.f32.mrf.mxu1  ;;  %v725_v53 = vadd.f32 %v724_v42, %v3616_v19 }
 0x1b1   :  { %v1471_v61 = vpack.c.bf16 %v1345_v58, %v1342_v34  ;;  %v3927_v29 = vpop.f32.mrf.mxu0 }
 0x1b2   :  { %v2926_v37 = vpop.f32.mrf.mxu1  ;;  %4342 = vst [vmem:[#allocation69_spill] sm:$0xff] %v3927_v29  ;;  %2350 = vst [vmem:[#allocation2 + $0x458] sm:$0xff] %v725_v53 }
 0x1b3   :  { %2986 = vmatprep.mubr.msk.bf16.mxu0 %vm1493_vm0, %v1471_v61  ;;  %3052 = vmatprep.mubr.msk.bf16.mxu1 %vm1493_vm0, %v1471_v61  ;;  %v728_v56 = vpop.f32.mrf.mxu0 }
 0x1b4   :  { %v1358_v59 = vpop.f32.mrf.mxu1  ;;  %2987 = vmatmul.mubr.msk.bf16.gmra.mxu0 %vm1493_vm0, %v1472_v1  ;;  %3053 = vmatmul.mubr.msk.bf16.gmra.mxu1 %vm1493_vm0, %v1472_v1  ;;  %v729_v34 = vadd.f32 %v728_v56, %v3616_v19 }
 0x1b5   :  { %v3932_v9 = vpop.f32.mrf.mxu0 }
 0x1b6   :  { %v2927_v24 = vpop.f32.mrf.mxu1  ;;  %4343 = vst [vmem:[#allocation70_spill] sm:$0xff] %v3932_v9  ;;  %2351 = vst [vmem:[#allocation2 + $0x470] sm:$0xff] %v729_v34 }
 0x1b7   :  { %v734_v42 = vpop.f32.mrf.mxu0  ;;  %v1474_v51 = vpack.c.bf16 %v2927_v24, %v2926_v37 }
 0x1b8   :  { %v1361_v2 = vpop.f32.mrf.mxu1  ;;  %v735_v29 = vadd.f32 %v734_v42, %v3616_v19 }
 0x1b9   :  { %v1473_v58 = vpack.c.bf16 %v1361_v2, %v1358_v59  ;;  %v3937_v1 = vpop.f32.mrf.mxu0 }
 0x1ba   :  { %v2930_v61 = vpop.f32.mrf.mxu1  ;;  %4344 = vst [vmem:[#allocation71_spill] sm:$0xff] %v3937_v1  ;;  %2352 = vst [vmem:[#allocation2 + $0x488] sm:$0xff] %v735_v29 }
 0x1bb   :  { %2990 = vmatprep.mubr.msk.bf16.mxu0 %vm1493_vm0, %v1473_v58  ;;  %3056 = vmatprep.mubr.msk.bf16.mxu1 %vm1493_vm0, %v1473_v58  ;;  %v738_v56 = vpop.f32.mrf.mxu0 }
 0x1bc   :  { %v1374_v53 = vpop.f32.mrf.mxu1  ;;  %2991 = vmatmul.mubr.msk.bf16.gmra.mxu0 %vm1493_vm0, %v1474_v51  ;;  %3057 = vmatmul.mubr.msk.bf16.gmra.mxu1 %vm1493_vm0, %v1474_v51  ;;  %v739_v59 = vadd.f32 %v738_v56, %v3616_v19 }
 0x1bd   :  { %v3942_v37 = vpop.f32.mrf.mxu0 }
 0x1be   :  { %v2931_v34 = vpop.f32.mrf.mxu1  ;;  %4345 = vst [vmem:[#allocation72_spill] sm:$0xff] %v3942_v37  ;;  %2353 = vst [vmem:[#allocation2 + $0x4a0] sm:$0xff] %v739_v59 }
 0x1bf   :  { %v744_v42 = vpop.f32.mrf.mxu0  ;;  %v1476_v9 = vpack.c.bf16 %v2931_v34, %v2930_v61 }
 0x1c0   :  { %v1377_v24 = vpop.f32.mrf.mxu1  ;;  %v745_v1 = vadd.f32 %v744_v42, %v3616_v19 }
 0x1c1   :  { %v1475_v2 = vpack.c.bf16 %v1377_v24, %v1374_v53  ;;  %v3947_v51 = vpop.f32.mrf.mxu0 }
 0x1c2   :  { %v2934_v58 = vpop.f32.mrf.mxu1  ;;  %4346 = vst [vmem:[#allocation73_spill] sm:$0xff] %v3947_v51  ;;  %2354 = vst [vmem:[#allocation2 + $0x4b8] sm:$0xff] %v745_v1 }
 0x1c3   :  { %2994 = vmatprep.mubr.msk.bf16.mxu0 %vm1493_vm0, %v1475_v2  ;;  %3060 = vmatprep.mubr.msk.bf16.mxu1 %vm1493_vm0, %v1475_v2  ;;  %v748_v56 = vpop.f32.mrf.mxu0 }
 0x1c4   :  { %v1390_v29 = vpop.f32.mrf.mxu1  ;;  %2995 = vmatmul.mubr.msk.bf16.gmra.mxu0 %vm1493_vm0, %v1476_v9  ;;  %3061 = vmatmul.mubr.msk.bf16.gmra.mxu1 %vm1493_vm0, %v1476_v9  ;;  %v749_v53 = vadd.f32 %v748_v56, %v3616_v19 }
 0x1c5   :  { %v3952_v61 = vpop.f32.mrf.mxu0 }
 0x1c6   :  { %v2935_v59 = vpop.f32.mrf.mxu1  ;;  %4347 = vst [vmem:[#allocation74_spill] sm:$0xff] %v3952_v61  ;;  %2355 = vst [vmem:[#allocation2 + $0x4d0] sm:$0xff] %v749_v53 }
 0x1c7   :  { %v754_v42 = vpop.f32.mrf.mxu0  ;;  %v1478_v37 = vpack.c.bf16 %v2935_v59, %v2934_v58 }
 0x1c8   :  { %v1393_v34 = vpop.f32.mrf.mxu1  ;;  %v755_v51 = vadd.f32 %v754_v42, %v3616_v19 }
 0x1c9   :  { %v1477_v24 = vpack.c.bf16 %v1393_v34, %v1390_v29  ;;  %v3957_v9 = vpop.f32.mrf.mxu0 }
 0x1ca   :  { %v2938_v2 = vpop.f32.mrf.mxu1  ;;  %4348 = vst [vmem:[#allocation75_spill] sm:$0xff] %v3957_v9  ;;  %2356 = vst [vmem:[#allocation2 + $0x4e8] sm:$0xff] %v755_v51 }
 0x1cb   :  { %2998 = vmatprep.mubr.msk.bf16.mxu0 %vm1493_vm0, %v1477_v24  ;;  %3064 = vmatprep.mubr.msk.bf16.mxu1 %vm1493_vm0, %v1477_v24  ;;  %v758_v56 = vpop.f32.mrf.mxu0 }
 0x1cc   :  { %v1406_v1 = vpop.f32.mrf.mxu1  ;;  %2999 = vmatmul.mubr.msk.bf16.gmra.mxu0 %vm1493_vm0, %v1478_v37  ;;  %3065 = vmatmul.mubr.msk.bf16.gmra.mxu1 %vm1493_vm0, %v1478_v37  ;;  %v759_v29 = vadd.f32 %v758_v56, %v3616_v19 }
 0x1cd   :  { %v3962_v58 = vpop.f32.mrf.mxu0 }
 0x1ce   :  { %v2939_v53 = vpop.f32.mrf.mxu1  ;;  %4349 = vst [vmem:[#allocation76_spill] sm:$0xff] %v3962_v58  ;;  %2357 = vst [vmem:[#allocation2 + $0x500] sm:$0xff] %v759_v29 }
 0x1cf   :  { %v764_v42 = vpop.f32.mrf.mxu0  ;;  %v1480_v61 = vpack.c.bf16 %v2939_v53, %v2938_v2 }
 0x1d0   :  { %v1409_v59 = vpop.f32.mrf.mxu1  ;;  %v765_v9 = vadd.f32 %v764_v42, %v3616_v19 }
 0x1d1   :  { %v1479_v34 = vpack.c.bf16 %v1409_v59, %v1406_v1  ;;  %v3967_v37 = vpop.f32.mrf.mxu0 }
 0x1d2   :  { %v2942_v24 = vpop.f32.mrf.mxu1  ;;  %4350 = vst [vmem:[#allocation77_spill] sm:$0xff] %v3967_v37  ;;  %2358 = vst [vmem:[#allocation2 + $0x518] sm:$0xff] %v765_v9 }
 0x1d3   :  { %3002 = vmatprep.mubr.msk.bf16.mxu0 %vm1493_vm0, %v1479_v34  ;;  %3068 = vmatprep.mubr.msk.bf16.mxu1 %vm1493_vm0, %v1479_v34  ;;  %v768_v56 = vpop.f32.mrf.mxu0 }
 0x1d4   :  { %v1422_v51 = vpop.f32.mrf.mxu1  ;;  %3003 = vmatmul.mubr.msk.bf16.gmra.mxu0 %vm1493_vm0, %v1480_v61  ;;  %3069 = vmatmul.mubr.msk.bf16.gmra.mxu1 %vm1493_vm0, %v1480_v61  ;;  %v769_v1 = vadd.f32 %v768_v56, %v3616_v19 }
 0x1d5   :  { %v3972_v2 = vpop.f32.mrf.mxu0 }
 0x1d6   :  { %v2943_v29 = vpop.f32.mrf.mxu1  ;;  %4351 = vst [vmem:[#allocation78_spill] sm:$0xff] %v3972_v2  ;;  %2359 = vst [vmem:[#allocation2 + $0x530] sm:$0xff] %v769_v1 }
 0x1d7   :  { %v774_v42 = vpop.f32.mrf.mxu0  ;;  %v1482_v58 = vpack.c.bf16 %v2943_v29, %v2942_v24 }
 0x1d8   :  { %v1425_v53 = vpop.f32.mrf.mxu1  ;;  %v775_v37 = vadd.f32 %v774_v42, %v3616_v19 }
 0x1d9   :  { %v1481_v59 = vpack.c.bf16 %v1425_v53, %v1422_v51  ;;  %v3977_v61 = vpop.f32.mrf.mxu0 }
 0x1da   :  { %v2946_v34 = vpop.f32.mrf.mxu1  ;;  %4352 = vst [vmem:[#allocation79_spill] sm:$0xff] %v3977_v61  ;;  %2360 = vst [vmem:[#allocation2 + $0x548] sm:$0xff] %v775_v37 }
 0x1db   :  { %3006 = vmatprep.mubr.msk.bf16.mxu0 %vm1493_vm0, %v1481_v59  ;;  %3072 = vmatprep.mubr.msk.bf16.mxu1 %vm1493_vm0, %v1481_v59  ;;  %v778_v56 = vpop.f32.mrf.mxu0 }
 0x1dc   :  { %v1438_v9 = vpop.f32.mrf.mxu1  ;;  %3007 = vmatmul.mubr.msk.bf16.gmra.mxu0 %vm1493_vm0, %v1482_v58  ;;  %3073 = vmatmul.mubr.msk.bf16.gmra.mxu1 %vm1493_vm0, %v1482_v58  ;;  %v779_v51 = vadd.f32 %v778_v56, %v3616_v19 }
 0x1dd   :  { %v3982_v24 = vpop.f32.mrf.mxu0 }
 0x1de   :  { %v2947_v1 = vpop.f32.mrf.mxu1  ;;  %2361 = vst [vmem:[#allocation2 + $0x560] sm:$0xff] %v779_v51 }
 0x1df   :  { %v784_v42 = vpop.f32.mrf.mxu0  ;;  %v1484_v2 = vpack.c.bf16 %v2947_v1, %v2946_v34 }
 0x1e0   :  { %v1441_v29 = vpop.f32.mrf.mxu1  ;;  %v785_v59 = vadd.f32 %v784_v42, %v3616_v19 }
 0x1e1   :  { %v1483_v53 = vpack.c.bf16 %v1441_v29, %v1438_v9  ;;  %v3987_v61 = vpop.f32.mrf.mxu0 }
 0x1e2   :  { %4353 = vst [vmem:[#allocation80_spill] sm:$0xff] %v3987_v61  ;;  %2362 = vst [vmem:[#allocation2 + $0x578] sm:$0xff] %v785_v59 }
 0x1e3   :  { %3010 = vmatprep.mubr.msk.bf16.mxu0 %vm1493_vm0, %v1483_v53  ;;  %3076 = vmatprep.mubr.msk.bf16.mxu1 %vm1493_vm0, %v1483_v53  ;;  %v788_v58 = vpop.f32.mrf.mxu0 }
 0x1e4   :  { %3011 = vmatmul.mubr.msk.bf16.gmra.mxu0 %vm1493_vm0, %v1484_v2  ;;  %3077 = vmatmul.mubr.msk.bf16.gmra.mxu1 %vm1493_vm0, %v1484_v2  ;;  %v789_v37 = vadd.f32 %v788_v58, %v3616_v19 }
 0x1e5   :  { %v3992_v56 = vpop.f32.mrf.mxu0 }
 0x1e6   :  { %4354 = vst [vmem:[#allocation81_spill] sm:$0xff] %v3992_v56  ;;  %2363 = vst [vmem:[#allocation2 + $0x590] sm:$0xff] %v789_v37 }
 0x1e7   :  { %v794_v34 = vpop.f32.mrf.mxu0 }
 0x1e8   :  { %v795_v9 = vadd.f32 %v794_v34, %v3616_v19  ;;  %v133_v34 = vsub.s32 2, %v3596_v12 }
 0x1e9   :  { %v3995_v1 = vpop.f32.mrf.mxu0 }
 0x1ea   :  { %4355 = vst [vmem:[#allocation82_spill] sm:$0xff] %v3995_v1  ;;  %2364 = vst [vmem:[#allocation2 + $0x5a8] sm:$0xff] %v795_v9  ;;  %v125_v9 = vsub.s32 0, %v3596_v12  ;;  %v4007_v1 = vrot.slane %v3611_v17, %v133_v34 }
 0x1eb   :  { %v798_v51 = vpop.f32.mrf.mxu0 }
 0x1ec   :  { %v799_v29 = vadd.f32 %v798_v51, %v3616_v19  ;;  %v4010_v51 = vrot.slane %v3611_v17, %v125_v9  ;;  %v857_v17 = vadd.f32 %v3581_v6, %v4007_v1 }
 0x1ed   :  { %v3998_v53 = vpop.f32.mrf.mxu0 }
 0x1ee   :  { %4356 = vst [vmem:[#allocation83_spill] sm:$0xff] %v3998_v53  ;;  %2365 = vst [vmem:[#allocation2 + $0x5c0] sm:$0xff] %v799_v29  ;;  %v854_v29 = vadd.f32 %v3575_v3, %v4007_v1  ;;  %v493_v12 = vadd.f32 %v3618_v20, %v4010_v51  ;;  %v507_v3 = vadd.f32 %v3647_v35, %v4010_v51 }
 0x1ef   :  { %v804_v2 = vpop.f32.mrf.mxu0  ;;  %v497_v20 = vadd.f32 %v3629_v25, %v4010_v51  ;;  %v870_v35 = vadd.f32 %v3587_v8, %v4007_v1  ;;  %v862_v25 = vadd.f32 %v3591_v10, %v4007_v1 }
 0x1f0   :  { %v805_v42 = vadd.f32 %v804_v2, %v3616_v19  ;;  %v503_v2 = vadd.f32 %v3636_v30, %v4010_v51 }
 0x1f1   :  { %v4001_v59 = vpop.f32.mrf.mxu0 }
 0x1f2   :  { %4357 = vst [vmem:[#allocation84_spill] sm:$0xff] %v4001_v59  ;;  %2366 = vst [vmem:[#allocation2 + $0x5d8] sm:$0xff] %v805_v42 }
 0x1f3   :  { %v808_v58 = vpop.f32.mrf.mxu0 }
 0x1f4   :  { %v809_v37 = vadd.f32 %v808_v58, %v3616_v19  ;;  %v846_v19 = vadd.f32 %v3579_v4, %v4007_v1  ;;  %v849_v4 = vadd.f32 %v3584_v7, %v4007_v1 }
 0x1f6   :  { %2367 = vst [vmem:[#allocation2 + $0x5f0] sm:$0xff] %v809_v37 }
 0x22c   :  { %v2952_v42 = vpop.f32.mrf.mxu0  ;;  %v3018_v59 = vpop.f32.mrf.mxu1 }
 0x22d   :  { %v2178_v58 = vadd.f32 %v2952_v42, %v503_v2  ;;  %v2370_v37 = vadd.f32 %v3018_v59, %v854_v29 }
 0x22e   :  { %v1624_v34 = vpop.f32.mrf.mxu0  ;;  %v1921_v56 = vpop.f32.mrf.mxu1 }
 0x22f   :  { %2242 = vst [vmem:[#allocation2 + $0x30] sm:$0xff] %v2178_v58  ;;  %2434 = vst [vmem:[#allocation2 + $0x40] sm:$0xff] %v2370_v37  ;;  %v2176_v30 = vadd.f32 %v1624_v34, %v493_v12  ;;  %v2368_v9 = vadd.f32 %v1921_v56, %v846_v19  ;;  %v523_v56 = vadd.f32 %v3672_v50, %v4010_v51 }
 0x230   :  { %v2953_v53 = vpop.f32.mrf.mxu0  ;;  %v3019_v61 = vpop.f32.mrf.mxu1  ;;  %v873_v50 = vadd.f32 %v3593_v11, %v4007_v1  ;;  %v527_v34 = vadd.f32 %v3683_v55, %v4010_v51  ;;  %v886_v55 = vadd.f32 %v3601_v14, %v4007_v1 }
 0x231   :  { %2240 = vst [vmem:[#allocation2] sm:$0xff] %v2176_v30  ;;  %2432 = vst [vmem:[#allocation2 + $0x10] sm:$0xff] %v2368_v9  ;;  %v2179_v59 = vadd.f32 %v2953_v53, %v507_v3  ;;  %v2371_v29 = vadd.f32 %v3019_v61, %v857_v17  ;;  %v513_v61 = vadd.f32 %v3654_v40, %v4010_v51 }
 0x232   :  { %v1627_v6 = vpop.f32.mrf.mxu0  ;;  %v1924_v2 = vpop.f32.mrf.mxu1  ;;  %v865_v40 = vadd.f32 %v3598_v13, %v4007_v1  ;;  %v517_v9 = vadd.f32 %v3665_v45, %v4010_v51  ;;  %v878_v45 = vadd.f32 %v3606_v16, %v4007_v1 }
 0x233   :  { %2243 = vst [vmem:[#allocation2 + $0x48] sm:$0xff] %v2179_v59  ;;  %2435 = vst [vmem:[#allocation2 + $0x58] sm:$0xff] %v2371_v29  ;;  %v2177_v42 = vadd.f32 %v1627_v6, %v497_v20  ;;  %v2369_v19 = vadd.f32 %v1924_v2, %v849_v4  ;;  %v543_v29 = vadd.f32 %v3707_v32, %v4010_v51 }
 0x234   :  { %v2956_v7 = vpop.f32.mrf.mxu0  ;;  %v3022_v12 = vpop.f32.mrf.mxu1  ;;  %v889_v32 = vadd.f32 %v3613_v18, %v4007_v1 }
 0x235   :  { %2241 = vst [vmem:[#allocation2 + $0x18] sm:$0xff] %v2177_v42  ;;  %2433 = vst [vmem:[#allocation2 + $0x28] sm:$0xff] %v2369_v19  ;;  %v2182_v53 = vadd.f32 %v2956_v7, %v523_v56  ;;  %v2374_v58 = vadd.f32 %v3022_v12, %v870_v35  ;;  %v533_v56 = vadd.f32 %v3690_v60, %v4010_v51 }
 0x236   :  { %v1640_v8 = vpop.f32.mrf.mxu0  ;;  %v1937_v37 = vpop.f32.mrf.mxu1  ;;  %v547_v12 = vadd.f32 %v3716_v44, %v4010_v51  ;;  %v881_v60 = vadd.f32 %v3621_v21, %v4007_v1  ;;  %v902_v44 = vadd.f32 %v3624_v23, %v4007_v1 }
 0x237   :  { %2246 = vst [vmem:[#allocation2 + $0x90] sm:$0xff] %v2182_v53  ;;  %2438 = vst [vmem:[#allocation2 + $0xa0] sm:$0xff] %v2374_v58  ;;  %v2180_v17 = vadd.f32 %v1640_v8, %v513_v61  ;;  %v2372_v3 = vadd.f32 %v1937_v37, %v862_v25  ;;  %v537_v58 = vadd.f32 %v3700_v22, %v4010_v51 }
 0x238   :  { %v2957_v10 = vpop.f32.mrf.mxu0  ;;  %v3023_v30 = vpop.f32.mrf.mxu1  ;;  %v894_v22 = vadd.f32 %v3631_v26, %v4007_v1 }
 0x239   :  { %2244 = vst [vmem:[#allocation2 + $0x60] sm:$0xff] %v2180_v17  ;;  %2436 = vst [vmem:[#allocation2 + $0x70] sm:$0xff] %v2372_v3  ;;  %v2183_v4 = vadd.f32 %v2957_v10, %v527_v34  ;;  %v2375_v20 = vadd.f32 %v3023_v30, %v873_v50  ;;  %v563_v34 = vadd.f32 %v3739_v49, %v4010_v51 }
 0x23a   :  { %v1643_v11 = vpop.f32.mrf.mxu0  ;;  %v1940_v59 = vpop.f32.mrf.mxu1  ;;  %v553_v30 = vadd.f32 %v3723_v54, %v4010_v51  ;;  %v905_v49 = vadd.f32 %v3633_v28, %v4007_v1  ;;  %v897_v54 = vadd.f32 %v3639_v31, %v4007_v1 }
 0x23b   :  { %2247 = vst [vmem:[#allocation2 + $0xa8] sm:$0xff] %v2183_v4  ;;  %2439 = vst [vmem:[#allocation2 + $0xb8] sm:$0xff] %v2375_v20  ;;  %v2181_v6 = vadd.f32 %v1643_v11, %v517_v9  ;;  %v2373_v2 = vadd.f32 %v1940_v59, %v865_v40  ;;  %v567_v20 = vadd.f32 %v3747_v57, %v4010_v51 }
 0x23c   :  { %v2960_v13 = vpop.f32.mrf.mxu0  ;;  %v3026_v35 = vpop.f32.mrf.mxu1  ;;  %v918_v57 = vadd.f32 %v3642_v33, %v4007_v1 }
 0x23d   :  { %2245 = vst [vmem:[#allocation2 + $0x78] sm:$0xff] %v2181_v6  ;;  %2437 = vst [vmem:[#allocation2 + $0x88] sm:$0xff] %v2373_v2  ;;  %v2186_v42 = vadd.f32 %v2960_v13, %v543_v29  ;;  %v2378_v19 = vadd.f32 %v3026_v35, %v886_v55  ;;  %v557_v29 = vadd.f32 %v3732_v27, %v4010_v51 }
 0x23e   :  { %v1656_v14 = vpop.f32.mrf.mxu0  ;;  %v1953_v7 = vpop.f32.mrf.mxu1  ;;  %v583_v35 = vadd.f32 %v3768_v63, %v4010_v51  ;;  %v910_v27 = vadd.f32 %v3649_v36, %v4007_v1  ;;  %v921_v63 = vadd.f32 %v3651_v38, %v4007_v1 }
 0x23f   :  { %2250 = vst [vmem:[#allocation2 + $0xf0] sm:$0xff] %v2186_v42  ;;  %2442 = vst [vmem:[#allocation2 + $0x100] sm:$0xff] %v2378_v19  ;;  %v2184_v25 = vadd.f32 %v1656_v14, %v533_v56  ;;  %v2376_v61 = vadd.f32 %v1953_v7, %v878_v45  ;;  %v573_v19 = vadd.f32 %v3754_v52, %v4010_v51 }
 0x240   :  { %v2961_v16 = vpop.f32.mrf.mxu0  ;;  %v3027_v53 = vpop.f32.mrf.mxu1  ;;  %v913_v52 = vadd.f32 %v3657_v41, %v4007_v1 }
 0x241   :  { %2248 = vst [vmem:[#allocation2 + $0xc0] sm:$0xff] %v2184_v25  ;;  %2440 = vst [vmem:[#allocation2 + $0xd0] sm:$0xff] %v2376_v61  ;;  %v2187_v8 = vadd.f32 %v2961_v16, %v547_v12  ;;  %v2379_v37 = vadd.f32 %v3027_v53, %v889_v32  ;;  %v587_v12 = vadd.f32 %v3775_v5, %v4010_v51 }
 0x242   :  { %v1659_v18 = vpop.f32.mrf.mxu0  ;;  %v1956_v50 = vpop.f32.mrf.mxu1  ;;  %v577_v53 = vadd.f32 %v3761_v62, %v4010_v51  ;;  %v934_v5 = vadd.f32 %v3660_v43, %v4007_v1  ;;  %v926_v62 = vadd.f32 %v3667_v46, %v4007_v1 }
 0x243   :  { %2251 = vst [vmem:[#allocation2 + $0x108] sm:$0xff] %v2187_v8  ;;  %2443 = vst [vmem:[#allocation2 + $0x118] sm:$0xff] %v2379_v37  ;;  %v2185_v17 = vadd.f32 %v1659_v18, %v537_v58  ;;  %v2377_v3 = vadd.f32 %v1956_v50, %v881_v60  ;;  %v603_v37 = vadd.f32 %v3796_v47, %v4010_v51 }
 0x244   :  { %v2964_v21 = vpop.f32.mrf.mxu0  ;;  %v3030_v10 = vpop.f32.mrf.mxu1  ;;  %v937_v47 = vadd.f32 %v3669_v48, %v4007_v1 }
 0x245   :  { %2249 = vst [vmem:[#allocation2 + $0xd8] sm:$0xff] %v2185_v17  ;;  %2441 = vst [vmem:[#allocation2 + $0xe8] sm:$0xff] %v2377_v3  ;;  %v2190_v40 = vadd.f32 %v2964_v21, %v563_v34  ;;  %v2382_v9 = vadd.f32 %v3030_v10, %v902_v44  ;;  %v593_v34 = vadd.f32 %v3782_v15, %v4010_v51  ;;  %v4358_v15 = vld [vmem:[#allocation5_spill] sm:$0xff] }
 0x246   :  { %v1672_v23 = vpop.f32.mrf.mxu0  ;;  %v1969_v4 = vpop.f32.mrf.mxu1  ;;  %v607_v10 = vadd.f32 %v3803_v39, %v4010_v51  ;;  %v4360_v39 = vld [vmem:[#allocation6_spill] sm:$0xff] }
 0x247   :  { %2254 = vst [vmem:[#allocation2 + $0x150] sm:$0xff] %v2190_v40  ;;  %2446 = vst [vmem:[#allocation2 + $0x160] sm:$0xff] %v2382_v9  ;;  %v2188_v11 = vadd.f32 %v1672_v23, %v553_v30  ;;  %v2380_v59 = vadd.f32 %v1969_v4, %v894_v22  ;;  %v929_v9 = vadd.f32 %v4358_v15, %v4007_v1  ;;  %v4359_v23 = vld [vmem:[#allocation35_spill] sm:$0xff] }
 0x248   :  { %v2965_v26 = vpop.f32.mrf.mxu0  ;;  %v3031_v55 = vpop.f32.mrf.mxu1  ;;  %v597_v4 = vadd.f32 %v4359_v23, %v4010_v51  ;;  %v4373_v23 = vld [vmem:[#allocation13_spill] sm:$0xff] }
 0x249   :  { %2252 = vst [vmem:[#allocation2 + $0x120] sm:$0xff] %v2188_v11  ;;  %2444 = vst [vmem:[#allocation2 + $0x130] sm:$0xff] %v2380_v59  ;;  %v2191_v6 = vadd.f32 %v2965_v26, %v567_v20  ;;  %v2383_v2 = vadd.f32 %v3031_v55, %v905_v49  ;;  %v950_v59 = vadd.f32 %v4360_v39, %v4007_v1  ;;  %v4361_v26 = vld [vmem:[#allocation48_spill] sm:$0xff] }
 0x24a   :  { %v1675_v28 = vpop.f32.mrf.mxu0  ;;  %v1972_v13 = vpop.f32.mrf.mxu1  ;;  %v623_v55 = vadd.f32 %v4361_v26, %v4010_v51  ;;  %v4375_v26 = vld [vmem:[#allocation14_spill] sm:$0xff] }
 0x24b   :  { %2255 = vst [vmem:[#allocation2 + $0x168] sm:$0xff] %v2191_v6  ;;  %2447 = vst [vmem:[#allocation2 + $0x178] sm:$0xff] %v2383_v2  ;;  %v2189_v45 = vadd.f32 %v1675_v28, %v557_v29  ;;  %v2381_v56 = vadd.f32 %v1972_v13, %v897_v54  ;;  %v4362_v28 = vld [vmem:[#allocation7_spill] sm:$0xff] }
 0x24c   :  { %v2968_v31 = vpop.f32.mrf.mxu0  ;;  %v3034_v42 = vpop.f32.mrf.mxu1  ;;  %v942_v13 = vadd.f32 %v4362_v28, %v4007_v1 }
 0x24d   :  { %2253 = vst [vmem:[#allocation2 + $0x138] sm:$0xff] %v2189_v45  ;;  %2445 = vst [vmem:[#allocation2 + $0x148] sm:$0xff] %v2381_v56  ;;  %v2194_v14 = vadd.f32 %v2968_v31, %v583_v35  ;;  %v2386_v7 = vadd.f32 %v3034_v42, %v918_v57  ;;  %v4363_v57 = vld [vmem:[#allocation42_spill] sm:$0xff] }
 0x24e   :  { %v1688_v33 = vpop.f32.mrf.mxu0  ;;  %v1985_v32 = vpop.f32.mrf.mxu1  ;;  %v613_v35 = vadd.f32 %v4363_v57, %v4010_v51  ;;  %v4377_v57 = vld [vmem:[#allocation15_spill] sm:$0xff] }
 0x24f   :  { %2258 = vst [vmem:[#allocation2 + $0x1b0] sm:$0xff] %v2194_v14  ;;  %2450 = vst [vmem:[#allocation2 + $0x1c0] sm:$0xff] %v2386_v7  ;;  %v2192_v25 = vadd.f32 %v1688_v33, %v573_v19  ;;  %v2384_v61 = vadd.f32 %v1985_v32, %v910_v27  ;;  %v4364_v27 = vld [vmem:[#allocation8_spill] sm:$0xff]  ;;  %v627_v14 = vadd.f32 %v3829_v0, %v4010_v51  ;;  %v4367_v0 = vld [vmem:[#allocation10_spill] sm:$0xff] }
 0x250   :  { %v2969_v36 = vpop.f32.mrf.mxu0  ;;  %v3035_v16 = vpop.f32.mrf.mxu1  ;;  %v953_v19 = vadd.f32 %v4364_v27, %v4007_v1 }
 0x251   :  { %2256 = vst [vmem:[#allocation2 + $0x180] sm:$0xff] %v2192_v25  ;;  %2448 = vst [vmem:[#allocation2 + $0x190] sm:$0xff] %v2384_v61  ;;  %v2195_v60 = vadd.f32 %v2969_v36, %v587_v12  ;;  %v2387_v58 = vadd.f32 %v3035_v16, %v921_v63  ;;  %v4365_v12 = vld [vmem:[#allocation9_spill] sm:$0xff] }
 0x252   :  { %v1691_v38 = vpop.f32.mrf.mxu0  ;;  %v1988_v8 = vpop.f32.mrf.mxu1  ;;  %v945_v25 = vadd.f32 %v4365_v12, %v4007_v1  ;;  %v4366_v61 = vld [vmem:[#allocation45_spill] sm:$0xff] }
 0x253   :  { %2259 = vst [vmem:[#allocation2 + $0x1c8] sm:$0xff] %v2195_v60  ;;  %2451 = vst [vmem:[#allocation2 + $0x1d8] sm:$0xff] %v2387_v58  ;;  %v2193_v18 = vadd.f32 %v1691_v38, %v577_v53  ;;  %v2385_v50 = vadd.f32 %v1988_v8, %v913_v52  ;;  %v617_v36 = vadd.f32 %v4366_v61, %v4010_v51  ;;  %v4368_v38 = vld [vmem:[#allocation52_spill] sm:$0xff] }
 0x254   :  { %v2972_v41 = vpop.f32.mrf.mxu0  ;;  %v3038_v44 = vpop.f32.mrf.mxu1  ;;  %v966_v58 = vadd.f32 %v4367_v0, %v4007_v1  ;;  %v643_v8 = vadd.f32 %v4368_v38, %v4010_v51 }
 0x255   :  { %2257 = vst [vmem:[#allocation2 + $0x198] sm:$0xff] %v2193_v18  ;;  %2449 = vst [vmem:[#allocation2 + $0x1a8] sm:$0xff] %v2385_v50  ;;  %v2198_v17 = vadd.f32 %v2972_v41, %v603_v37  ;;  %v2390_v3 = vadd.f32 %v3038_v44, %v934_v5  ;;  %v4369_v41 = vld [vmem:[#allocation11_spill] sm:$0xff] }
 0x256   :  { %v1704_v43 = vpop.f32.mrf.mxu0  ;;  %v2001_v21 = vpop.f32.mrf.mxu1  ;;  %v958_v44 = vadd.f32 %v4369_v41, %v4007_v1 }
 0x257   :  { %2262 = vst [vmem:[#allocation2 + $0x210] sm:$0xff] %v2198_v17  ;;  %2454 = vst [vmem:[#allocation2 + $0x220] sm:$0xff] %v2390_v3  ;;  %v2196_v22 = vadd.f32 %v1704_v43, %v593_v34  ;;  %v2388_v30 = vadd.f32 %v2001_v21, %v926_v62  ;;  %v4370_v62 = vld [vmem:[#allocation50_spill] sm:$0xff] }
 0x258   :  { %v2973_v46 = vpop.f32.mrf.mxu0  ;;  %v3039_v40 = vpop.f32.mrf.mxu1  ;;  %v633_v34 = vadd.f32 %v4370_v62, %v4010_v51 }
 0x259   :  { %2260 = vst [vmem:[#allocation2 + $0x1e0] sm:$0xff] %v2196_v22  ;;  %2452 = vst [vmem:[#allocation2 + $0x1f0] sm:$0xff] %v2388_v30  ;;  %v2199_v49 = vadd.f32 %v2973_v46, %v607_v10  ;;  %v2391_v20 = vadd.f32 %v3039_v40, %v937_v47  ;;  %v4371_v47 = vld [vmem:[#allocation12_spill] sm:$0xff]  ;;  %v4372_v22 = vld [vmem:[#allocation53_spill] sm:$0xff] }
 0x25a   :  { %v1707_v48 = vpop.f32.mrf.mxu0  ;;  %v2004_v11 = vpop.f32.mrf.mxu1  ;;  %v969_v10 = vadd.f32 %v4371_v47, %v4007_v1  ;;  %v647_v30 = vadd.f32 %v4372_v22, %v4010_v51 }
 0x25b   :  { %2263 = vst [vmem:[#allocation2 + $0x228] sm:$0xff] %v2199_v49  ;;  %2455 = vst [vmem:[#allocation2 + $0x238] sm:$0xff] %v2391_v20  ;;  %v2197_v54 = vadd.f32 %v1707_v48, %v597_v4  ;;  %v2389_v29 = vadd.f32 %v2004_v11, %v929_v9  ;;  %v961_v4 = vadd.f32 %v4373_v23, %v4007_v1  ;;  %v4374_v49 = vld [vmem:[#allocation51_spill] sm:$0xff] }
 0x25c   :  { %v2976_v6 = vpop.f32.mrf.mxu0  ;;  %v3042_v2 = vpop.f32.mrf.mxu1  ;;  %v637_v20 = vadd.f32 %v4374_v49, %v4010_v51 }
 0x25d   :  { %2261 = vst [vmem:[#allocation2 + $0x1f8] sm:$0xff] %v2197_v54  ;;  %2453 = vst [vmem:[#allocation2 + $0x208] sm:$0xff] %v2389_v29  ;;  %v2202_v45 = vadd.f32 %v2976_v6, %v623_v55  ;;  %v2394_v56 = vadd.f32 %v3042_v2, %v950_v59  ;;  %v982_v55 = vadd.f32 %v4375_v26, %v4007_v1  ;;  %v4376_v54 = vld [vmem:[#allocation56_spill] sm:$0xff] }
 0x25e   :  { %v1720_v31 = vpop.f32.mrf.mxu0  ;;  %v2017_v42 = vpop.f32.mrf.mxu1  ;;  %v663_v29 = vadd.f32 %v4376_v54, %v4010_v51 }
 0x25f   :  { %2266 = vst [vmem:[#allocation2 + $0x270] sm:$0xff] %v2202_v45  ;;  %2458 = vst [vmem:[#allocation2 + $0x280] sm:$0xff] %v2394_v56  ;;  %v2200_v7 = vadd.f32 %v1720_v31, %v613_v35  ;;  %v2392_v33 = vadd.f32 %v2017_v42, %v942_v13  ;;  %v974_v35 = vadd.f32 %v4377_v57, %v4007_v1  ;;  %v4378_v45 = vld [vmem:[#allocation54_spill] sm:$0xff] }
 0x260   :  { %v2977_v32 = vpop.f32.mrf.mxu0  ;;  %v3043_v63 = vpop.f32.mrf.mxu1  ;;  %v653_v56 = vadd.f32 %v4378_v45, %v4010_v51 }
 0x261   :  { %2264 = vst [vmem:[#allocation2 + $0x240] sm:$0xff] %v2200_v7  ;;  %2456 = vst [vmem:[#allocation2 + $0x250] sm:$0xff] %v2392_v33  ;;  %v2203_v16 = vadd.f32 %v2977_v32, %v627_v14  ;;  %v2395_v52 = vadd.f32 %v3043_v63, %v953_v19  ;;  %v4379_v14 = vld [vmem:[#allocation16_spill] sm:$0xff]  ;;  %v4380_v33 = vld [vmem:[#allocation57_spill] sm:$0xff] }
 0x262   :  { %v1723_v53 = vpop.f32.mrf.mxu0  ;;  %v2020_v60 = vpop.f32.mrf.mxu1  ;;  %v985_v7 = vadd.f32 %v4379_v14, %v4007_v1  ;;  %v667_v32 = vadd.f32 %v4380_v33, %v4010_v51 }
 0x263   :  { %2267 = vst [vmem:[#allocation2 + $0x288] sm:$0xff] %v2203_v16  ;;  %2459 = vst [vmem:[#allocation2 + $0x298] sm:$0xff] %v2395_v52  ;;  %v2201_v5 = vadd.f32 %v1723_v53, %v617_v36  ;;  %v2393_v37 = vadd.f32 %v2020_v60, %v945_v25  ;;  %v4381_v36 = vld [vmem:[#allocation17_spill] sm:$0xff]  ;;  %v4382_v52 = vld [vmem:[#allocation55_spill] sm:$0xff] }
 0x264   :  { %v2980_v18 = vpop.f32.mrf.mxu0  ;;  %v3046_v50 = vpop.f32.mrf.mxu1  ;;  %v977_v16 = vadd.f32 %v4381_v36, %v4007_v1  ;;  %v657_v53 = vadd.f32 %v4382_v52, %v4010_v51 }
 0x265   :  { %2265 = vst [vmem:[#allocation2 + $0x258] sm:$0xff] %v2201_v5  ;;  %2457 = vst [vmem:[#allocation2 + $0x268] sm:$0xff] %v2393_v37  ;;  %v2206_v17 = vadd.f32 %v2980_v18, %v643_v8  ;;  %v2398_v3 = vadd.f32 %v3046_v50, %v966_v58  ;;  %v4383_v8 = vld [vmem:[#allocation18_spill] sm:$0xff]  ;;  %v4384_v37 = vld [vmem:[#allocation60_spill] sm:$0xff] }
 0x266   :  { %v1736_v43 = vpop.f32.mrf.mxu0  ;;  %v2033_v21 = vpop.f32.mrf.mxu1  ;;  %v998_v5 = vadd.f32 %v4383_v8, %v4007_v1  ;;  %v683_v18 = vadd.f32 %v4384_v37, %v4010_v51 }
 0x267   :  { %2270 = vst [vmem:[#allocation2 + $0x2d0] sm:$0xff] %v2206_v17  ;;  %2462 = vst [vmem:[#allocation2 + $0x2e0] sm:$0xff] %v2398_v3  ;;  %v2204_v46 = vadd.f32 %v1736_v43, %v633_v34  ;;  %v2396_v40 = vadd.f32 %v2033_v21, %v958_v44  ;;  %v4385_v34 = vld [vmem:[#allocation19_spill] sm:$0xff]  ;;  %v4386_v3 = vld [vmem:[#allocation58_spill] sm:$0xff] }
 0x268   :  { %v2981_v15 = vpop.f32.mrf.mxu0  ;;  %v3047_v9 = vpop.f32.mrf.mxu1  ;;  %v990_v17 = vadd.f32 %v4385_v34, %v4007_v1  ;;  %v673_v43 = vadd.f32 %v4386_v3, %v4010_v51 }
 0x269   :  { %2268 = vst [vmem:[#allocation2 + $0x2a0] sm:$0xff] %v2204_v46  ;;  %2460 = vst [vmem:[#allocation2 + $0x2b0] sm:$0xff] %v2396_v40  ;;  %v2207_v48 = vadd.f32 %v2981_v15, %v647_v30  ;;  %v2399_v11 = vadd.f32 %v3047_v9, %v969_v10  ;;  %v4387_v30 = vld [vmem:[#allocation20_spill] sm:$0xff]  ;;  %v4388_v40 = vld [vmem:[#allocation61_spill] sm:$0xff] }
 0x26a   :  { %v1739_v39 = vpop.f32.mrf.mxu0  ;;  %v2036_v59 = vpop.f32.mrf.mxu1  ;;  %v1001_v46 = vadd.f32 %v4387_v30, %v4007_v1  ;;  %v687_v15 = vadd.f32 %v4388_v40, %v4010_v51 }
 0x26b   :  { %2271 = vst [vmem:[#allocation2 + $0x2e8] sm:$0xff] %v2207_v48  ;;  %2463 = vst [vmem:[#allocation2 + $0x2f8] sm:$0xff] %v2399_v11  ;;  %v2205_v6 = vadd.f32 %v1739_v39, %v637_v20  ;;  %v2397_v2 = vadd.f32 %v2036_v59, %v961_v4  ;;  %v4389_v20 = vld [vmem:[#allocation21_spill] sm:$0xff]  ;;  %v4390_v11 = vld [vmem:[#allocation59_spill] sm:$0xff] }
 0x26c   :  { %v2984_v28 = vpop.f32.mrf.mxu0  ;;  %v3050_v13 = vpop.f32.mrf.mxu1  ;;  %v993_v48 = vadd.f32 %v4389_v20, %v4007_v1  ;;  %v677_v39 = vadd.f32 %v4390_v11, %v4010_v51 }
 0x26d   :  { %2269 = vst [vmem:[#allocation2 + $0x2b8] sm:$0xff] %v2205_v6  ;;  %2461 = vst [vmem:[#allocation2 + $0x2c8] sm:$0xff] %v2397_v2  ;;  %v2210_v31 = vadd.f32 %v2984_v28, %v663_v29  ;;  %v2402_v42 = vadd.f32 %v3050_v13, %v982_v55  ;;  %v4391_v29 = vld [vmem:[#allocation22_spill] sm:$0xff]  ;;  %v4392_v2 = vld [vmem:[#allocation64_spill] sm:$0xff] }
 0x26e   :  { %v1752_v27 = vpop.f32.mrf.mxu0  ;;  %v2049_v19 = vpop.f32.mrf.mxu1  ;;  %v1014_v6 = vadd.f32 %v4391_v29, %v4007_v1  ;;  %v703_v28 = vadd.f32 %v4392_v2, %v4010_v51 }
 0x26f   :  { %2274 = vst [vmem:[#allocation2 + $0x330] sm:$0xff] %v2210_v31  ;;  %2466 = vst [vmem:[#allocation2 + $0x340] sm:$0xff] %v2402_v42  ;;  %v2208_v63 = vadd.f32 %v1752_v27, %v653_v56  ;;  %v2400_v12 = vadd.f32 %v2049_v19, %v974_v35  ;;  %v4393_v56 = vld [vmem:[#allocation23_spill] sm:$0xff]  ;;  %v4394_v42 = vld [vmem:[#allocation62_spill] sm:$0xff] }
 0x270   :  { %v2985_v25 = vpop.f32.mrf.mxu0  ;;  %v3051_v61 = vpop.f32.mrf.mxu1  ;;  %v1006_v31 = vadd.f32 %v4393_v56, %v4007_v1  ;;  %v693_v27 = vadd.f32 %v4394_v42, %v4010_v51 }
 0x271   :  { %2272 = vst [vmem:[#allocation2 + $0x300] sm:$0xff] %v2208_v63  ;;  %2464 = vst [vmem:[#allocation2 + $0x310] sm:$0xff] %v2400_v12  ;;  %v2211_v60 = vadd.f32 %v2985_v25, %v667_v32  ;;  %v2403_v0 = vadd.f32 %v3051_v61, %v985_v7  ;;  %v4395_v32 = vld [vmem:[#allocation24_spill] sm:$0xff]  ;;  %v4396_v12 = vld [vmem:[#allocation65_spill] sm:$0xff] }
 0x272   :  { %v1755_v58 = vpop.f32.mrf.mxu0  ;;  %v2052_v38 = vpop.f32.mrf.mxu1  ;;  %v1017_v63 = vadd.f32 %v4395_v32, %v4007_v1  ;;  %v707_v25 = vadd.f32 %v4396_v12, %v4010_v51 }
 0x273   :  { %2275 = vst [vmem:[#allocation2 + $0x348] sm:$0xff] %v2211_v60  ;;  %2467 = vst [vmem:[#allocation2 + $0x358] sm:$0xff] %v2403_v0  ;;  %v2209_v50 = vadd.f32 %v1755_v58, %v657_v53  ;;  %v2401_v41 = vadd.f32 %v2052_v38, %v977_v16  ;;  %v4397_v53 = vld [vmem:[#allocation25_spill] sm:$0xff]  ;;  %v4398_v0 = vld [vmem:[#allocation63_spill] sm:$0xff] }
 0x274   :  { %v2988_v44 = vpop.f32.mrf.mxu0  ;;  %v3054_v62 = vpop.f32.mrf.mxu1  ;;  %v1009_v60 = vadd.f32 %v4397_v53, %v4007_v1  ;;  %v697_v58 = vadd.f32 %v4398_v0, %v4010_v51 }
 0x275   :  { %2273 = vst [vmem:[#allocation2 + $0x318] sm:$0xff] %v2209_v50  ;;  %2465 = vst [vmem:[#allocation2 + $0x328] sm:$0xff] %v2401_v41  ;;  %v2214_v21 = vadd.f32 %v2988_v44, %v683_v18  ;;  %v2406_v47 = vadd.f32 %v3054_v62, %v998_v5  ;;  %v4399_v18 = vld [vmem:[#allocation26_spill] sm:$0xff]  ;;  %v4400_v41 = vld [vmem:[#allocation68_spill] sm:$0xff] }
 0x276   :  { %v1768_v10 = vpop.f32.mrf.mxu0  ;;  %v2065_v22 = vpop.f32.mrf.mxu1  ;;  %v1030_v50 = vadd.f32 %v4399_v18, %v4007_v1  ;;  %v723_v44 = vadd.f32 %v4400_v41, %v4010_v51 }
 0x277   :  { %2278 = vst [vmem:[#allocation2 + $0x390] sm:$0xff] %v2214_v21  ;;  %2470 = vst [vmem:[#allocation2 + $0x3a0] sm:$0xff] %v2406_v47  ;;  %v2212_v9 = vadd.f32 %v1768_v10, %v673_v43  ;;  %v2404_v23 = vadd.f32 %v2065_v22, %v990_v17  ;;  %v4401_v43 = vld [vmem:[#allocation27_spill] sm:$0xff]  ;;  %v4402_v47 = vld [vmem:[#allocation66_spill] sm:$0xff] }
 0x278   :  { %v2989_v4 = vpop.f32.mrf.mxu0  ;;  %v3055_v49 = vpop.f32.mrf.mxu1  ;;  %v1022_v21 = vadd.f32 %v4401_v43, %v4007_v1  ;;  %v713_v10 = vadd.f32 %v4402_v47, %v4010_v51 }
 0x279   :  { %2276 = vst [vmem:[#allocation2 + $0x360] sm:$0xff] %v2212_v9  ;;  %2468 = vst [vmem:[#allocation2 + $0x370] sm:$0xff] %v2404_v23  ;;  %v2215_v59 = vadd.f32 %v2989_v4, %v687_v15  ;;  %v2407_v26 = vadd.f32 %v3055_v49, %v1001_v46  ;;  %v4403_v15 = vld [vmem:[#allocation28_spill] sm:$0xff]  ;;  %v4404_v23 = vld [vmem:[#allocation69_spill] sm:$0xff] }
 0x27a   :  { %v1771_v55 = vpop.f32.mrf.mxu0  ;;  %v2068_v54 = vpop.f32.mrf.mxu1  ;;  %v1033_v9 = vadd.f32 %v4403_v15, %v4007_v1  ;;  %v727_v4 = vadd.f32 %v4404_v23, %v4010_v51 }
 0x27b   :  { %2279 = vst [vmem:[#allocation2 + $0x3a8] sm:$0xff] %v2215_v59  ;;  %2471 = vst [vmem:[#allocation2 + $0x3b8] sm:$0xff] %v2407_v26  ;;  %v2213_v13 = vadd.f32 %v1771_v55, %v677_v39  ;;  %v2405_v57 = vadd.f32 %v2068_v54, %v993_v48  ;;  %v4405_v39 = vld [vmem:[#allocation29_spill] sm:$0xff]  ;;  %v4406_v26 = vld [vmem:[#allocation67_spill] sm:$0xff] }
 0x27c   :  { %v2992_v35 = vpop.f32.mrf.mxu0  ;;  %v3058_v45 = vpop.f32.mrf.mxu1  ;;  %v1025_v59 = vadd.f32 %v4405_v39, %v4007_v1  ;;  %v717_v55 = vadd.f32 %v4406_v26, %v4010_v51 }
 0x27d   :  { %2277 = vst [vmem:[#allocation2 + $0x378] sm:$0xff] %v2213_v13  ;;  %2469 = vst [vmem:[#allocation2 + $0x388] sm:$0xff] %v2405_v57  ;;  %v2218_v19 = vadd.f32 %v2992_v35, %v703_v28  ;;  %v2410_v14 = vadd.f32 %v3058_v45, %v1014_v6  ;;  %v4407_v28 = vld [vmem:[#allocation30_spill] sm:$0xff]  ;;  %v4408_v57 = vld [vmem:[#allocation72_spill] sm:$0xff] }
 0x27e   :  { %v1784_v7 = vpop.f32.mrf.mxu0  ;;  %v2081_v33 = vpop.f32.mrf.mxu1  ;;  %v1046_v13 = vadd.f32 %v4407_v28, %v4007_v1  ;;  %v743_v35 = vadd.f32 %v4408_v57, %v4010_v51 }
 0x27f   :  { %2282 = vst [vmem:[#allocation2 + $0x3f0] sm:$0xff] %v2218_v19  ;;  %2474 = vst [vmem:[#allocation2 + $0x400] sm:$0xff] %v2410_v14  ;;  %v2216_v61 = vadd.f32 %v1784_v7, %v693_v27  ;;  %v2408_v36 = vadd.f32 %v2081_v33, %v1006_v31  ;;  %v4409_v27 = vld [vmem:[#allocation31_spill] sm:$0xff]  ;;  %v4410_v14 = vld [vmem:[#allocation70_spill] sm:$0xff] }
 0x280   :  { %v2993_v16 = vpop.f32.mrf.mxu0  ;;  %v3059_v52 = vpop.f32.mrf.mxu1  ;;  %v1038_v19 = vadd.f32 %v4409_v27, %v4007_v1  ;;  %v733_v7 = vadd.f32 %v4410_v14, %v4010_v51  ;;  %v4424_v14 = vld [vmem:[#allocation40_spill] sm:$0xff] }
 0x281   :  { %2280 = vst [vmem:[#allocation2 + $0x3c0] sm:$0xff] %v2216_v61  ;;  %2472 = vst [vmem:[#allocation2 + $0x3d0] sm:$0xff] %v2408_v36  ;;  %v2219_v38 = vadd.f32 %v2993_v16, %v707_v25  ;;  %v2411_v8 = vadd.f32 %v3059_v52, %v1017_v63  ;;  %v4411_v25 = vld [vmem:[#allocation32_spill] sm:$0xff]  ;;  %v4412_v36 = vld [vmem:[#allocation73_spill] sm:$0xff] }
 0x282   :  { %v1787_v5 = vpop.f32.mrf.mxu0  ;;  %v2084_v37 = vpop.f32.mrf.mxu1  ;;  %v1049_v61 = vadd.f32 %v4411_v25, %v4007_v1  ;;  %v747_v16 = vadd.f32 %v4412_v36, %v4010_v51 }
 0x283   :  { %2283 = vst [vmem:[#allocation2 + $0x408] sm:$0xff] %v2219_v38  ;;  %2475 = vst [vmem:[#allocation2 + $0x418] sm:$0xff] %v2411_v8  ;;  %v2217_v62 = vadd.f32 %v1787_v5, %v697_v58  ;;  %v2409_v34 = vadd.f32 %v2084_v37, %v1009_v60  ;;  %v4413_v58 = vld [vmem:[#allocation33_spill] sm:$0xff]  ;;  %v4414_v8 = vld [vmem:[#allocation71_spill] sm:$0xff] }
 0x284   :  { %v2996_v17 = vpop.f32.mrf.mxu0  ;;  %v3062_v3 = vpop.f32.mrf.mxu1  ;;  %v1041_v38 = vadd.f32 %v4413_v58, %v4007_v1  ;;  %v737_v5 = vadd.f32 %v4414_v8, %v4010_v51 }
 0x285   :  { %2281 = vst [vmem:[#allocation2 + $0x3d8] sm:$0xff] %v2217_v62  ;;  %2473 = vst [vmem:[#allocation2 + $0x3e8] sm:$0xff] %v2409_v34  ;;  %v2222_v22 = vadd.f32 %v2996_v17, %v723_v44  ;;  %v2414_v30 = vadd.f32 %v3062_v3, %v1030_v50  ;;  %v4415_v44 = vld [vmem:[#allocation34_spill] sm:$0xff]  ;;  %v4416_v34 = vld [vmem:[#allocation76_spill] sm:$0xff] }
 0x286   :  { %v1800_v46 = vpop.f32.mrf.mxu0  ;;  %v2097_v40 = vpop.f32.mrf.mxu1  ;;  %v1062_v62 = vadd.f32 %v4415_v44, %v4007_v1  ;;  %v763_v17 = vadd.f32 %v4416_v34, %v4010_v51 }
 0x287   :  { %2286 = vst [vmem:[#allocation2 + $0x450] sm:$0xff] %v2222_v22  ;;  %2478 = vst [vmem:[#allocation2 + $0x460] sm:$0xff] %v2414_v30  ;;  %v2220_v49 = vadd.f32 %v1800_v46, %v713_v10  ;;  %v2412_v20 = vadd.f32 %v2097_v40, %v1022_v21  ;;  %v4417_v10 = vld [vmem:[#allocation36_spill] sm:$0xff]  ;;  %v4418_v30 = vld [vmem:[#allocation74_spill] sm:$0xff] }
 0x288   :  { %v2997_v48 = vpop.f32.mrf.mxu0  ;;  %v3063_v11 = vpop.f32.mrf.mxu1  ;;  %v1054_v22 = vadd.f32 %v4417_v10, %v4007_v1  ;;  %v753_v46 = vadd.f32 %v4418_v30, %v4010_v51 }
 0x289   :  { %2284 = vst [vmem:[#allocation2 + $0x420] sm:$0xff] %v2220_v49  ;;  %2476 = vst [vmem:[#allocation2 + $0x430] sm:$0xff] %v2412_v20  ;;  %v2223_v54 = vadd.f32 %v2997_v48, %v727_v4  ;;  %v2415_v29 = vadd.f32 %v3063_v11, %v1033_v9  ;;  %v4419_v4 = vld [vmem:[#allocation37_spill] sm:$0xff] }
 0x28a   :  { %v1803_v6 = vpop.f32.mrf.mxu0  ;;  %v2100_v2 = vpop.f32.mrf.mxu1  ;;  %v1065_v49 = vadd.f32 %v4419_v4, %v4007_v1  ;;  %v4420_v20 = vld [vmem:[#allocation77_spill] sm:$0xff] }
 0x28b   :  { %2287 = vst [vmem:[#allocation2 + $0x468] sm:$0xff] %v2223_v54  ;;  %2479 = vst [vmem:[#allocation2 + $0x478] sm:$0xff] %v2415_v29  ;;  %v2221_v45 = vadd.f32 %v1803_v6, %v717_v55  ;;  %v2413_v56 = vadd.f32 %v2100_v2, %v1025_v59  ;;  %v767_v48 = vadd.f32 %v4420_v20, %v4010_v51  ;;  %v4421_v55 = vld [vmem:[#allocation38_spill] sm:$0xff]  ;;  %v4422_v29 = vld [vmem:[#allocation75_spill] sm:$0xff] }
 0x28c   :  { %v3000_v31 = vpop.f32.mrf.mxu0  ;;  %v3066_v42 = vpop.f32.mrf.mxu1  ;;  %v1057_v54 = vadd.f32 %v4421_v55, %v4007_v1  ;;  %v757_v6 = vadd.f32 %v4422_v29, %v4010_v51 }
 0x28d   :  { %2285 = vst [vmem:[#allocation2 + $0x438] sm:$0xff] %v2221_v45  ;;  %2477 = vst [vmem:[#allocation2 + $0x448] sm:$0xff] %v2413_v56  ;;  %v2226_v33 = vadd.f32 %v3000_v31, %v743_v35  ;;  %v2418_v32 = vadd.f32 %v3066_v42, %v1046_v13  ;;  %v4423_v35 = vld [vmem:[#allocation39_spill] sm:$0xff]  ;;  %v783_v56 = vadd.f32 %v3982_v24, %v4010_v51  ;;  %v4426_v24 = vld [vmem:[#allocation41_spill] sm:$0xff] }
 0x28e   :  { %v1816_v63 = vpop.f32.mrf.mxu0  ;;  %v2113_v12 = vpop.f32.mrf.mxu1  ;;  %v1078_v45 = vadd.f32 %v4423_v35, %v4007_v1  ;;  %v1081_v36 = vadd.f32 %v4426_v24, %v4007_v1 }
 0x28f   :  { %2290 = vst [vmem:[#allocation2 + $0x4b0] sm:$0xff] %v2226_v33  ;;  %2482 = vst [vmem:[#allocation2 + $0x4c0] sm:$0xff] %v2418_v32  ;;  %v2224_v52 = vadd.f32 %v1816_v63, %v733_v7  ;;  %v2416_v53 = vadd.f32 %v2113_v12, %v1038_v19  ;;  %v1070_v7 = vadd.f32 %v4424_v14, %v4007_v1  ;;  %v4425_v33 = vld [vmem:[#allocation78_spill] sm:$0xff] }
 0x290   :  { %v3001_v60 = vpop.f32.mrf.mxu0  ;;  %v3067_v0 = vpop.f32.mrf.mxu1  ;;  %v773_v32 = vadd.f32 %v4425_v33, %v4010_v51 }
 0x291   :  { %2288 = vst [vmem:[#allocation2 + $0x480] sm:$0xff] %v2224_v52  ;;  %2480 = vst [vmem:[#allocation2 + $0x490] sm:$0xff] %v2416_v53  ;;  %v2227_v37 = vadd.f32 %v3001_v60, %v747_v16  ;;  %v2419_v18 = vadd.f32 %v3067_v0, %v1049_v61  ;;  %v4427_v16 = vld [vmem:[#allocation80_spill] sm:$0xff] }
 0x292   :  { %v1819_v50 = vpop.f32.mrf.mxu0  ;;  %v2116_v41 = vpop.f32.mrf.mxu1  ;;  %v787_v52 = vadd.f32 %v4427_v16, %v4010_v51 }
 0x293   :  { %2291 = vst [vmem:[#allocation2 + $0x4c8] sm:$0xff] %v2227_v37  ;;  %2483 = vst [vmem:[#allocation2 + $0x4d8] sm:$0xff] %v2419_v18  ;;  %v2225_v3 = vadd.f32 %v1819_v50, %v737_v5  ;;  %v2417_v43 = vadd.f32 %v2116_v41, %v1041_v38  ;;  %v4428_v38 = vld [vmem:[#allocation43_spill] sm:$0xff] }
 0x294   :  { %v3004_v21 = vpop.f32.mrf.mxu0  ;;  %v3070_v47 = vpop.f32.mrf.mxu1  ;;  %v1073_v8 = vadd.f32 %v4428_v38, %v4007_v1  ;;  %v4429_v5 = vld [vmem:[#allocation79_spill] sm:$0xff] }
 0x295   :  { %2289 = vst [vmem:[#allocation2 + $0x498] sm:$0xff] %v2225_v3  ;;  %2481 = vst [vmem:[#allocation2 + $0x4a8] sm:$0xff] %v2417_v43  ;;  %v2230_v40 = vadd.f32 %v3004_v21, %v763_v17  ;;  %v2422_v15 = vadd.f32 %v3070_v47, %v1062_v62  ;;  %v777_v37 = vadd.f32 %v4429_v5, %v4010_v51  ;;  %v4430_v62 = vld [vmem:[#allocation44_spill] sm:$0xff]  ;;  %v4431_v17 = vld [vmem:[#allocation83_spill] sm:$0xff] }
 0x296   :  { %v1832_v9 = vpop.f32.mrf.mxu0  ;;  %v2129_v23 = vpop.f32.mrf.mxu1  ;;  %v1094_v34 = vadd.f32 %v4430_v62, %v4007_v1  ;;  %v803_v3 = vadd.f32 %v4431_v17, %v4010_v51 }
 0x297   :  { %2294 = vst [vmem:[#allocation2 + $0x510] sm:$0xff] %v2230_v40  ;;  %2486 = vst [vmem:[#allocation2 + $0x520] sm:$0xff] %v2422_v15  ;;  %v2228_v11 = vadd.f32 %v1832_v9, %v753_v46  ;;  %v2420_v39 = vadd.f32 %v2129_v23, %v1054_v22  ;;  %v4432_v22 = vld [vmem:[#allocation46_spill] sm:$0xff]  ;;  %v4433_v46 = vld [vmem:[#allocation81_spill] sm:$0xff] }
 0x298   :  { %v3005_v59 = vpop.f32.mrf.mxu0  ;;  %v3071_v26 = vpop.f32.mrf.mxu1  ;;  %v1086_v30 = vadd.f32 %v4432_v22, %v4007_v1  ;;  %v793_v40 = vadd.f32 %v4433_v46, %v4010_v51 }
 0x299   :  { %2292 = vst [vmem:[#allocation2 + $0x4e0] sm:$0xff] %v2228_v11  ;;  %2484 = vst [vmem:[#allocation2 + $0x4f0] sm:$0xff] %v2420_v39  ;;  %v2231_v2 = vadd.f32 %v3005_v59, %v767_v48  ;;  %v2423_v28 = vadd.f32 %v3071_v26, %v1065_v49  ;;  %v4434_v49 = vld [vmem:[#allocation47_spill] sm:$0xff]  ;;  %v4435_v48 = vld [vmem:[#allocation84_spill] sm:$0xff] }
 0x29a   :  { %v1835_v13 = vpop.f32.mrf.mxu0  ;;  %v2132_v57 = vpop.f32.mrf.mxu1  ;;  %v1097_v20 = vadd.f32 %v4434_v49, %v4007_v1  ;;  %v807_v11 = vadd.f32 %v4435_v48, %v4010_v51 }
 0x29b   :  { %2295 = vst [vmem:[#allocation2 + $0x528] sm:$0xff] %v2231_v2  ;;  %2487 = vst [vmem:[#allocation2 + $0x538] sm:$0xff] %v2423_v28  ;;  %v2229_v31 = vadd.f32 %v1835_v13, %v757_v6  ;;  %v2421_v42 = vadd.f32 %v2132_v57, %v1057_v54  ;;  %v4436_v54 = vld [vmem:[#allocation49_spill] sm:$0xff]  ;;  %v4437_v6 = vld [vmem:[#allocation82_spill] sm:$0xff] }
 0x29c   :  { %v3008_v27 = vpop.f32.mrf.mxu0  ;;  %v3074_v19 = vpop.f32.mrf.mxu1  ;;  %v1089_v29 = vadd.f32 %v4436_v54, %v4007_v1  ;;  %v797_v2 = vadd.f32 %v4437_v6, %v4010_v51 }
 0x29d   :  { %2293 = vst [vmem:[#allocation2 + $0x4f8] sm:$0xff] %v2229_v31  ;;  %2485 = vst [vmem:[#allocation2 + $0x508] sm:$0xff] %v2421_v42  ;;  %v2234_v63 = vadd.f32 %v3008_v27, %v783_v56  ;;  %v2426_v12 = vadd.f32 %v3074_v19, %v1078_v45 }
 0x29e   :  { %v1848_v25 = vpop.f32.mrf.mxu0  ;;  %v2145_v61 = vpop.f32.mrf.mxu1 }
 0x29f   :  { %2298 = vst [vmem:[#allocation2 + $0x570] sm:$0xff] %v2234_v63  ;;  %2490 = vst [vmem:[#allocation2 + $0x580] sm:$0xff] %v2426_v12  ;;  %v2232_v53 = vadd.f32 %v1848_v25, %v773_v32  ;;  %v2424_v60 = vadd.f32 %v2145_v61, %v1070_v7 }
 0x2a0   :  { %v3009_v0 = vpop.f32.mrf.mxu0  ;;  %v3075_v58 = vpop.f32.mrf.mxu1 }
 0x2a1   :  { %2296 = vst [vmem:[#allocation2 + $0x540] sm:$0xff] %v2232_v53  ;;  %2488 = vst [vmem:[#allocation2 + $0x550] sm:$0xff] %v2424_v60  ;;  %v2235_v18 = vadd.f32 %v3009_v0, %v787_v52  ;;  %v2427_v50 = vadd.f32 %v3075_v58, %v1081_v36 }
 0x2a2   :  { %v1851_v41 = vpop.f32.mrf.mxu0  ;;  %v2148_v44 = vpop.f32.mrf.mxu1 }
 0x2a3   :  { %2299 = vst [vmem:[#allocation2 + $0x588] sm:$0xff] %v2235_v18  ;;  %2491 = vst [vmem:[#allocation2 + $0x598] sm:$0xff] %v2427_v50  ;;  %v2233_v43 = vadd.f32 %v1851_v41, %v777_v37  ;;  %v2425_v21 = vadd.f32 %v2148_v44, %v1073_v8 }
 0x2a4   :  { %v3012_v47 = vpop.f32.mrf.mxu0  ;;  %v3078_v10 = vpop.f32.mrf.mxu1 }
 0x2a5   :  { %2297 = vst [vmem:[#allocation2 + $0x558] sm:$0xff] %v2233_v43  ;;  %2489 = vst [vmem:[#allocation2 + $0x568] sm:$0xff] %v2425_v21  ;;  %v2238_v15 = vadd.f32 %v3012_v47, %v803_v3  ;;  %v2430_v9 = vadd.f32 %v3078_v10, %v1094_v34 }
 0x2a6   :  { %v1864_v23 = vpop.f32.mrf.mxu0  ;;  %v2161_v4 = vpop.f32.mrf.mxu1 }
 0x2a7   :  { %2302 = vst [vmem:[#allocation2 + $0x5d0] sm:$0xff] %v2238_v15  ;;  %2494 = vst [vmem:[#allocation2 + $0x5e0] sm:$0xff] %v2430_v9  ;;  %v2236_v39 = vadd.f32 %v1864_v23, %v793_v40  ;;  %v2428_v59 = vadd.f32 %v2161_v4, %v1086_v30 }
 0x2a8   :  { %v3013_v26 = vpop.f32.mrf.mxu0  ;;  %v3079_v55 = vpop.f32.mrf.mxu1 }
 0x2a9   :  { %2300 = vst [vmem:[#allocation2 + $0x5a0] sm:$0xff] %v2236_v39  ;;  %2492 = vst [vmem:[#allocation2 + $0x5b0] sm:$0xff] %v2428_v59  ;;  %v2239_v28 = vadd.f32 %v3013_v26, %v807_v11  ;;  %v2431_v13 = vadd.f32 %v3079_v55, %v1097_v20 }
 0x2aa   :  { %v1867_v57 = vpop.f32.mrf.mxu0  ;;  %v2164_v35 = vpop.f32.mrf.mxu1 }
 0x2ab   :  { %2303 = vst [vmem:[#allocation2 + $0x5e8] sm:$0xff] %v2239_v28  ;;  %2495 = vst [vmem:[#allocation2 + $0x5f8] sm:$0xff] %v2431_v13  ;;  %v2237_v45 = vadd.f32 %v1867_v57, %v797_v2  ;;  %v2429_v56 = vadd.f32 %v2164_v35, %v1089_v29 }
 0x2ad   :  { %2301 = vst [vmem:[#allocation2 + $0x5b8] sm:$0xff] %v2237_v45  ;;  %2493 = vst [vmem:[#allocation2 + $0x5c8] sm:$0xff] %v2429_v56 }
 0x2ae   :  { %3169 = shalt.err (!%p3166_p4)
}
 0x2af   :  { %s3182_s28 = smov 384   ;;  %s3183_s29 = smov 24  }
 0x2b0   :  { %2507 = dma.vmem_to_hbm [thread:$0]  %s2502_s26, 24576, %s4277_s6, [#allocation3], %s3182_s28, %s3182_s28, %s3183_s29  }
 0x2b1   :  { %3178 = dma.done.wait [#allocation3], 24576  }
 0x2b2   :  { %3179 = vsyncadd [#allocation3], 4294942720 }
 0x2b3   :  { %2511 = vsyncpa [#allocation3], 1 }

</bundles_post_ra>
